<compile_context>
chip_gen: v7x
topology: tpu7x:2x2x1
jax: 0.10.0
libtpu: 0.0.40
codegen_flags: <defaults>
</compile_context>

<pallas_src>
import functools

import numpy as np
import jax
import jax.numpy as jnp
from jax import lax
from jax.experimental import pallas as pl
from jax.experimental.pallas import tpu as pltpu

C_IN = 2080
KH = KW = 3
TAPS = KH * KW          # 9
TAPS_PAD = 16           # pad tap dim to 2 f32 sublane tiles
BN_EPS = 1e-5


def _round_up(x, m):
    return (x + m - 1) // m * m


def _lane_shift(x, s, n):
    """Circular left-shift of a (1, n) row by s lanes (s may be negative).

    Correctness relies on the per-tap source masks having zeroed exactly the
    elements whose destination would fall outside the image -- those are the
    only elements that wrap, so the wrapped contribution is exactly zero.
    """
    s = s % n
    if s == 0:
        return x
    return jnp.concatenate([x[:, s:], x[:, :s]], axis=1)


def _attn_kernel(x_ref, w_ref, m_ref, b_ref, o_ref, p_acc, *, bt, H, W):
    """Grid = (batch tiles, channel-reduction tiles); one step of it.

    x_ref: (bt, ct, H*W)        feature-map channel chunk for bt images (VMEM)
    w_ref: (1, TAPS_PAD, ct)    BN-folded conv weight chunk, one row per 3x3 tap (VMEM)
    m_ref: (TAPS_PAD, H*W) f32  per-tap source-validity masks for the conv halo (VMEM)
    b_ref: (1,) f32 SMEM        BN-folded conv bias
    o_ref: (1, bt, 1) f32       pooled attention scalar per image
    p_acc: (bt, TAPS_PAD, H*W)  f32 scratch accumulating tap maps across channel chunks
    """
    HW = H * W
    k = pl.program_id(1)

    @pl.when(k == 0)
    def _init():
        p_acc[...] = jnp.zeros_like(p_acc)

    # Accumulate all 9 tap maps for each image with one MXU matmul per image:
    #   p[t, s] += sum_c w[t, c] * x[c, s]   (this channel chunk).
    w_blk = w_ref[0]                                   # (TAPS_PAD, ct)
    acc_unroll = _round_up(HW, 128) <= 512             # keep live ranges bounded at big H*W

    def _acc_body(b, carry):
        p_acc[b] = p_acc[b] + jnp.dot(w_blk, x_ref[b],
                                      preferred_element_type=jnp.float32)
        return carry

    lax.fori_loop(0, bt, _acc_body, None, unroll=acc_unroll)

    # Epilogue on the last channel chunk: halo combine + bias + ReLU + mean pool.
    @pl.when(k == pl.num_programs(1) - 1)
    def _epilogue():
        bias = b_ref[0]
        inv_hw = 1.0 / float(HW)
        pooled_rows = []
        for b in range(bt):                            # bt <= 16, static
            acc = jnp.zeros((1, HW), jnp.float32)
            for t in range(TAPS):
                oh = t // KW - 1
                ow = t % KW - 1
                s = oh * W + ow                        # static flattened shift
                pt = p_acc[b, t:t + 1, :] * m_ref[t:t + 1, :]   # mask BEFORE shift
                acc = acc + _lane_shift(pt, s, HW)
            y = jnp.maximum(acc + bias, 0.0)                      # conv+BN bias, ReLU
            pooled_rows.append(jnp.sum(y, axis=1, keepdims=True) * inv_hw)
        o_ref[0] = jnp.concatenate(pooled_rows, axis=0)           # one (bt, 1) store


def _choose_tiling(N, HW, x_itemsize):
    """Pick (bt images / step, kc channel chunks) under a v7x-safe VMEM budget."""
    hw_pad = _round_up(HW, 128)
    budget = 40 * 1024 * 1024          # headroom under v7x's 64 MiB physical VMEM / TC
    # >= 2 batch grid steps whenever N >= 2 so both v7x TensorCores get work;
    # up to 16 images per step to amortize per-grid-step overhead on v5e/v6e.
    bt_cap = min(16, max(1, -(-N // 2)))
    # ct = C_IN / kc must be a multiple of 8 (sublane constraint on the x block).
    kc_candidates = [k for k in (1, 2, 4, 5, 10, 13, 16, 20, 26, 65, 130, 260)
                     if C_IN % k == 0 and (C_IN // k) % 8 == 0]

    def vmem_need(bt, ct):
        return (2 * bt * ct * hw_pad * x_itemsize               # x block, double-buffered
                + bt * TAPS_PAD * hw_pad * 4                    # tap-map scratch
                + 2 * TAPS_PAD * _round_up(ct, 128) * x_itemsize  # w block, double-buffered
                + 2 * TAPS_PAD * hw_pad * 4                     # halo masks
                + 2 * bt * 128 * 4)                             # output block

    for bt in range(bt_cap, 0, -1):          # prefer big batch tiles ...
        for kc in kc_candidates:             # ... with as few channel chunks as possible
            ct = C_IN // kc
            need = vmem_need(bt, ct)
            if need <= budget:
                return bt, kc, ct, need
    # Fallback for extremely large H*W: smallest tiles, let the VMEM limit grow.
    # TODO(synk): add a spatial (H*W) grid axis if feature maps ever exceed this fallback.
    kc = kc_candidates[-1]
    ct = C_IN // kc
    return 1, kc, ct, vmem_need(1, ct)


def wang_attention_net_pallas(features_nchw, conv_w, conv_b, bn_gamma, bn_beta,
                              bn_mean, bn_var):
    """features_nchw: (N, 2080, H, W) (PyTorch layout, f32 or bf16). Returns (N, 1, 1, 1)."""
    N, C, H, W = features_nchw.shape
    assert C == C_IN
    HW = H * W

    # Free metadata reshape of the contiguous NCHW input -- no transpose, no pad, no cast.
    x = features_nchw.reshape(N, C, HW)

    # Fold eval-mode BatchNorm into the conv: w' = w*scale, b' = scale*(conv_b - mean) + beta.
    scale = bn_gamma[0].astype(jnp.float32) * lax.rsqrt(
        bn_var[0].astype(jnp.float32) + BN_EPS)
    w_taps = conv_w[0].reshape(C, TAPS).T.astype(jnp.float32) * scale        # (9, C)
    bias = jnp.reshape(scale * (conv_b[0].astype(jnp.float32) - bn_mean[0]) + bn_beta[0],
                       (1,)).astype(jnp.float32)

    # Tiling: bt images per step, kc channel chunks of ct = C/kc channels.
    bt, kc, ct, need = _choose_tiling(N, HW, x.dtype.itemsize)
    grid_b = pl.cdiv(N, bt)
    grid = (grid_b, kc)

    # Weight laid out as (kc, TAPS_PAD, ct) so each channel chunk is a clean (16, ct) block.
    w_pad = jnp.zeros((TAPS_PAD, C), jnp.float32).at[:TAPS, :].set(w_taps)
    w_chunks = w_pad.reshape(TAPS_PAD, kc, ct).transpose(1, 0, 2).astype(x.dtype)

    # Per-tap SOURCE-validity masks over the flattened (H, W) map (conv padding=1).
    # Source j (row_s, col_s) is valid for tap (oh, ow) iff dest (row_s-oh, col_s-ow)
    # lies inside the image.  (These masks also zero every element that the circular
    # lane shift in the kernel would wrap.)
    rows = np.repeat(np.arange(H), W)
    cols = np.tile(np.arange(W), H)
    mask_np = np.zeros((TAPS_PAD, HW), np.float32)
    for t in range(TAPS):
        oh, ow = t // KW - 1, t % KW - 1
        mask_np[t] = ((rows - oh >= 0) & (rows - oh < H) &
                      (cols - ow >= 0) & (cols - ow < W)).astype(np.float32)
    masks = jnp.asarray(mask_np)

    # Explicit VMEM limit: always >= 32 MiB (v5e default is only 16 MiB), normally capped
    # well under v7x's 64 MiB physical VMEM; only the extreme fallback may exceed the cap.
    vmem_limit = int(min(need + (8 << 20), 56 << 20))
    vmem_limit = max(vmem_limit, 32 << 20, need + (2 << 20))

    kernel = functools.partial(_attn_kernel, bt=bt, H=H, W=W)
    out = pl.pallas_call(
        kernel,
        out_shape=jax.ShapeDtypeStruct((grid_b, bt, 1), jnp.float32),
        grid=grid,
        in_specs=[
            pl.BlockSpec((bt, ct, HW), lambda g, k: (g, k, 0)),
            pl.BlockSpec((1, TAPS_PAD, ct), lambda g, k: (k, 0, 0)),
            pl.BlockSpec((TAPS_PAD, HW), lambda g, k: (0, 0)),
            pl.BlockSpec(memory_space=pltpu.MemorySpace.SMEM),
        ],
        out_specs=pl.BlockSpec((1, bt, 1), lambda g, k: (g, 0, 0)),
        scratch_shapes=[pltpu.VMEM((bt, TAPS_PAD, HW), jnp.float32)],
        compiler_params=pltpu.CompilerParams(
            dimension_semantics=("parallel", "arbitrary"),
            vmem_limit_bytes=vmem_limit),
    )(x, w_chunks, masks, bias)

    # Tail rows of the last (partial) batch block are garbage by construction; drop them.
    return out.reshape(grid_b * bt, 1)[:N].reshape(N, 1, 1, 1)


def _reference(features_nchw, conv_w, conv_b, bn_gamma, bn_beta, bn_mean, bn_var):
    """Pure-JAX reference of the PyTorch forward (eval-mode BN)."""
    x_nhwc = jnp.transpose(features_nchw, (0, 2, 3, 1))
    w_hwio = jnp.transpose(conv_w, (2, 3, 1, 0))  # (3,3,C,1)
    y = lax.conv_general_dilated(
        x_nhwc, w_hwio, window_strides=(1, 1), padding=((1, 1), (1, 1)),
        dimension_numbers=("NHWC", "HWIO", "NHWC"))
    y = y + conv_b[0]
    y = (y - bn_mean[0]) * (bn_gamma[0] / jnp.sqrt(bn_var[0] + BN_EPS)) + bn_beta[0]
    y = jnp.maximum(y, 0.0)
    return jnp.mean(y, axis=(1, 2)).reshape(-1, 1, 1, 1)


if __name__ == "__main__":
    key = jax.random.PRNGKey(0)
    k_x, k_w, k_b = jax.random.split(key, 3)

    N, H, W = 2, 8, 8
    features = jax.random.normal(k_x, (N, C_IN, H, W), dtype=jnp.float32)

    # Deterministic parameter init (Conv2d weight/bias ~ small uniform; BN defaults).
    fan_in = C_IN * KH * KW
    bound = 1.0 / (fan_in ** 0.5)
    conv_w = jax.random.uniform(k_w, (1, C_IN, KH, KW), jnp.float32, -bound, bound)
    conv_b = jax.random.uniform(k_b, (1,), jnp.float32, -bound, bound)
    bn_gamma = jnp.ones((1,), jnp.float32)
    bn_beta = jnp.zeros((1,), jnp.float32)
    bn_mean = jnp.zeros((1,), jnp.float32)
    bn_var = jnp.ones((1,), jnp.float32)

    out = wang_attention_net_pallas(features, conv_w, conv_b, bn_gamma, bn_beta,
                                    bn_mean, bn_var)
    out = jax.block_until_ready(out)

    ref = _reference(features, conv_w, conv_b, bn_gamma, bn_beta, bn_mean, bn_var)
    assert out.shape == (N, 1, 1, 1)
    assert jnp.allclose(out, ref, atol=1e-4, rtol=1e-4), (out, ref)

    print("KERNEL_OK")
</pallas_src>

<mosaic_0001>
module attributes {stable_mosaic.version = 11 : i64} {
  func.func @_attn_kernel(%arg0: i32, %arg1: i32, %arg2: memref<1x2080x64xf32, #tpu.memory_space<vmem>>, %arg3: memref<1x16x2080xf32, #tpu.memory_space<vmem>>, %arg4: memref<16x64xf32, #tpu.memory_space<vmem>>, %arg5: memref<1xf32, #tpu.memory_space<smem>>, %arg6: memref<1x1x1xf32, #tpu.memory_space<vmem>>, %arg7: memref<1x16x64xf32, #tpu.memory_space<vmem>>) attributes {dimension_semantics = [#tpu.dimension_semantics<parallel>, #tpu.dimension_semantics<arbitrary>], iteration_bounds = array<i64: 2, 1>, scalar_prefetch = 0 : i64, scratch_operands = 1 : i64, tpu.core_type = #tpu.core_type<tc>, window_params = [{transform_indices = @transform_0, window_bounds = array<i64: 1, 2080, 64>}, {transform_indices = @transform_1, window_bounds = array<i64: 1, 16, 2080>}, {pipeline_mode = #tpu.pipeline_mode<synchronous>, transform_indices = @transform_2, window_bounds = array<i64: 16, 64>}, {transform_indices = @transform_3, window_bounds = array<i64: 1>}, {transform_indices = @transform_4, window_bounds = array<i64: 1, 1, 1>}]} {
    %c0_i32 = arith.constant 0 : i32
    %0 = arith.cmpi eq, %arg1, %c0_i32 : i32
    %1 = arith.extui %0 : i1 to i32
    %c0_i32_0 = arith.constant 0 : i32
    %2 = arith.cmpi ne, %1, %c0_i32_0 : i32
    scf.if %2 {
      %cst_12 = arith.constant 0.000000e+00 : f32
      %20 = vector.broadcast %cst_12 : f32 to vector<1x16x64xf32>
      %c0_13 = arith.constant 0 : index
      %c0_14 = arith.constant 0 : index
      %c0_15 = arith.constant 0 : index
      %21 = vector.load %arg7[%c0_13, %c0_14, %c0_15] : memref<1x16x64xf32, #tpu.memory_space<vmem>>, vector<1x16x64xf32>
      tpu.vector_store %arg7[%c0_13, %c0_14, %c0_15], %20 {strides = array<i32>} : memref<1x16x64xf32, #tpu.memory_space<vmem>>, vector<1x16x64xf32>,
    } else {
    }
    %c0 = arith.constant 0 : index
    %c0_1 = arith.constant 0 : index
    %c0_2 = arith.constant 0 : index
    %3 = vector.load %arg3[%c0, %c0_1, %c0_2] : memref<1x16x2080xf32, #tpu.memory_space<vmem>>, vector<1x16x2080xf32>
    %4 = vector.shape_cast %3 : vector<1x16x2080xf32> to vector<16x2080xf32>
    %c0_i32_3 = arith.constant 0 : i32
    %5 = arith.index_cast %c0_i32_3 : i32 to index
    %c0_4 = arith.constant 0 : index
    %c0_5 = arith.constant 0 : index
    %6 = vector.load %arg7[%5, %c0_4, %c0_5] : memref<1x16x64xf32, #tpu.memory_space<vmem>>, vector<1x16x64xf32>
    %7 = vector.shape_cast %6 : vector<1x16x64xf32> to vector<16x64xf32>
    %8 = arith.index_cast %c0_i32_3 : i32 to index
    %c0_6 = arith.constant 0 : index
    %c0_7 = arith.constant 0 : index
    %9 = vector.load %arg2[%8, %c0_6, %c0_7] : memref<1x2080x64xf32, #tpu.memory_space<vmem>>, vector<1x2080x64xf32>
    %10 = vector.shape_cast %9 : vector<1x2080x64xf32> to vector<2080x64xf32>
    %cst = arith.constant dense<0.000000e+00> : vector<16x64xf32>
    %11 = tpu.matmul %4, %10, %cst {dimension_numbers = #tpu.dot_dimension_numbers<[1], [0], [0], [1], [0, 0, 1, 1], [], []>} : vector<16x2080xf32>, vector<2080x64xf32>, vector<16x64xf32> -> vector<16x64xf32>
    %12 = arith.addf %7, %11 : vector<16x64xf32>
    %13 = arith.index_cast %c0_i32_3 : i32 to index
    %c0_8 = arith.constant 0 : index
    %c0_9 = arith.constant 0 : index
    %14 = vector.load %arg7[%13, %c0_8, %c0_9] : memref<1x16x64xf32, #tpu.memory_space<vmem>>, vector<1x16x64xf32>
    %15 = vector.shape_cast %14 : vector<1x16x64xf32> to vector<16x64xf32>
    %16 = vector.shape_cast %12 : vector<16x64xf32> to vector<1x16x64xf32>
    tpu.vector_store %arg7[%13, %c0_8, %c0_9], %16 {strides = array<i32>} : memref<1x16x64xf32, #tpu.memory_space<vmem>>, vector<1x16x64xf32>,
    %c1_i32 = arith.constant 1 : i32
    %c0_i32_10 = arith.constant 0 : i32
    %17 = arith.cmpi eq, %arg1, %c0_i32_10 : i32
    %18 = arith.extui %17 : i1 to i32
    %c0_i32_11 = arith.constant 0 : i32
    %19 = arith.cmpi ne, %18, %c0_i32_11 : i32
    scf.if %19 {
      %c0_12 = arith.constant 0 : index
      %20 = memref.load %arg5[%c0_12] : memref<1xf32, #tpu.memory_space<smem>>
      %cst_13 = arith.constant 0.000000e+00 : f32
      %21 = vector.broadcast %cst_13 : f32 to vector<1x64xf32>
      %c0_14 = arith.constant 0 : index
      %c0_15 = arith.constant 0 : index
      %c0_16 = arith.constant 0 : index
      %22 = vector.load %arg7[%c0_14, %c0_15, %c0_16] : memref<1x16x64xf32, #tpu.memory_space<vmem>>, vector<1x1x64xf32>
      %23 = vector.shape_cast %22 : vector<1x1x64xf32> to vector<1x64xf32>
      %c0_17 = arith.constant 0 : index
      %c0_18 = arith.constant 0 : index
      %24 = vector.load %arg4[%c0_17, %c0_18] : memref<16x64xf32, #tpu.memory_space<vmem>>, vector<1x64xf32>
      %25 = arith.mulf %23, %24 : vector<1x64xf32>
      %26 = vector.extract_strided_slice %25 {offsets = [0, 55], sizes = [1, 9], strides = [1, 1]} : vector<1x64xf32> to vector<1x9xf32>
      %27 = vector.extract_strided_slice %25 {offsets = [0, 0], sizes = [1, 55], strides = [1, 1]} : vector<1x64xf32> to vector<1x55xf32>
      %28 = tpu.concatenate %26, %27 in 1 : vector<1x9xf32>, vector<1x55xf32> -> vector<1x64xf32>
      %29 = arith.addf %21, %28 : vector<1x64xf32>
      %c0_19 = arith.constant 0 : index
      %c1 = arith.constant 1 : index
      %c0_20 = arith.constant 0 : index
      %30 = vector.load %arg7[%c0_19, %c1, %c0_20] : memref<1x16x64xf32, #tpu.memory_space<vmem>>, vector<1x1x64xf32>
      %31 = vector.shape_cast %30 : vector<1x1x64xf32> to vector<1x64xf32>
      %c1_21 = arith.constant 1 : index
      %c0_22 = arith.constant 0 : index
      %32 = vector.load %arg4[%c1_21, %c0_22] : memref<16x64xf32, #tpu.memory_space<vmem>>, vector<1x64xf32>
      %33 = arith.mulf %31, %32 : vector<1x64xf32>
      %34 = vector.extract_strided_slice %33 {offsets = [0, 56], sizes = [1, 8], strides = [1, 1]} : vector<1x64xf32> to vector<1x8xf32>
      %35 = vector.extract_strided_slice %33 {offsets = [0, 0], sizes = [1, 56], strides = [1, 1]} : vector<1x64xf32> to vector<1x56xf32>
      %36 = tpu.concatenate %34, %35 in 1 : vector<1x8xf32>, vector<1x56xf32> -> vector<1x64xf32>
      %37 = arith.addf %29, %36 : vector<1x64xf32>
      %c0_23 = arith.constant 0 : index
      %c2 = arith.constant 2 : index
      %c0_24 = arith.constant 0 : index
      %38 = vector.load %arg7[%c0_23, %c2, %c0_24] : memref<1x16x64xf32, #tpu.memory_space<vmem>>, vector<1x1x64xf32>
      %39 = vector.shape_cast %38 : vector<1x1x64xf32> to vector<1x64xf32>
      %c2_25 = arith.constant 2 : index
      %c0_26 = arith.constant 0 : index
      %40 = vector.load %arg4[%c2_25, %c0_26] : memref<16x64xf32, #tpu.memory_space<vmem>>, vector<1x64xf32>
      %41 = arith.mulf %39, %40 : vector<1x64xf32>
      %42 = vector.extract_strided_slice %41 {offsets = [0, 57], sizes = [1, 7], strides = [1, 1]} : vector<1x64xf32> to vector<1x7xf32>
      %43 = vector.extract_strided_slice %41 {offsets = [0, 0], sizes = [1, 57], strides = [1, 1]} : vector<1x64xf32> to vector<1x57xf32>
      %44 = tpu.concatenate %42, %43 in 1 : vector<1x7xf32>, vector<1x57xf32> -> vector<1x64xf32>
      %45 = arith.addf %37, %44 : vector<1x64xf32>
      %c0_27 = arith.constant 0 : index
      %c3 = arith.constant 3 : index
      %c0_28 = arith.constant 0 : index
      %46 = vector.load %arg7[%c0_27, %c3, %c0_28] : memref<1x16x64xf32, #tpu.memory_space<vmem>>, vector<1x1x64xf32>
      %47 = vector.shape_cast %46 : vector<1x1x64xf32> to vector<1x64xf32>
      %c3_29 = arith.constant 3 : index
      %c0_30 = arith.constant 0 : index
      %48 = vector.load %arg4[%c3_29, %c0_30] : memref<16x64xf32, #tpu.memory_space<vmem>>, vector<1x64xf32>
      %49 = arith.mulf %47, %48 : vector<1x64xf32>
      %50 = vector.extract_strided_slice %49 {offsets = [0, 63], sizes = [1, 1], strides = [1, 1]} : vector<1x64xf32> to vector<1x1xf32>
      %51 = vector.extract_strided_slice %49 {offsets = [0, 0], sizes = [1, 63], strides = [1, 1]} : vector<1x64xf32> to vector<1x63xf32>
      %52 = tpu.concatenate %50, %51 in 1 : vector<1x1xf32>, vector<1x63xf32> -> vector<1x64xf32>
      %53 = arith.addf %45, %52 : vector<1x64xf32>
      %c0_31 = arith.constant 0 : index
      %c4 = arith.constant 4 : index
      %c0_32 = arith.constant 0 : index
      %54 = vector.load %arg7[%c0_31, %c4, %c0_32] : memref<1x16x64xf32, #tpu.memory_space<vmem>>, vector<1x1x64xf32>
      %55 = vector.shape_cast %54 : vector<1x1x64xf32> to vector<1x64xf32>
      %c4_33 = arith.constant 4 : index
      %c0_34 = arith.constant 0 : index
      %56 = vector.load %arg4[%c4_33, %c0_34] : memref<16x64xf32, #tpu.memory_space<vmem>>, vector<1x64xf32>
      %57 = arith.mulf %55, %56 : vector<1x64xf32>
      %58 = arith.addf %53, %57 : vector<1x64xf32>
      %c0_35 = arith.constant 0 : index
      %c5 = arith.constant 5 : index
      %c0_36 = arith.constant 0 : index
      %59 = vector.load %arg7[%c0_35, %c5, %c0_36] : memref<1x16x64xf32, #tpu.memory_space<vmem>>, vector<1x1x64xf32>
      %60 = vector.shape_cast %59 : vector<1x1x64xf32> to vector<1x64xf32>
      %c5_37 = arith.constant 5 : index
      %c0_38 = arith.constant 0 : index
      %61 = vector.load %arg4[%c5_37, %c0_38] : memref<16x64xf32, #tpu.memory_space<vmem>>, vector<1x64xf32>
      %62 = arith.mulf %60, %61 : vector<1x64xf32>
      %63 = vector.extract_strided_slice %62 {offsets = [0, 1], sizes = [1, 63], strides = [1, 1]} : vector<1x64xf32> to vector<1x63xf32>
      %64 = vector.extract_strided_slice %62 {offsets = [0, 0], sizes = [1, 1], strides = [1, 1]} : vector<1x64xf32> to vector<1x1xf32>
      %65 = tpu.concatenate %63, %64 in 1 : vector<1x63xf32>, vector<1x1xf32> -> vector<1x64xf32>
      %66 = arith.addf %58, %65 : vector<1x64xf32>
      %c0_39 = arith.constant 0 : index
      %c6 = arith.constant 6 : index
      %c0_40 = arith.constant 0 : index
      %67 = vector.load %arg7[%c0_39, %c6, %c0_40] : memref<1x16x64xf32, #tpu.memory_space<vmem>>, vector<1x1x64xf32>
      %68 = vector.shape_cast %67 : vector<1x1x64xf32> to vector<1x64xf32>
      %c6_41 = arith.constant 6 : index
      %c0_42 = arith.constant 0 : index
      %69 = vector.load %arg4[%c6_41, %c0_42] : memref<16x64xf32, #tpu.memory_space<vmem>>, vector<1x64xf32>
      %70 = arith.mulf %68, %69 : vector<1x64xf32>
      %71 = vector.extract_strided_slice %70 {offsets = [0, 7], sizes = [1, 57], strides = [1, 1]} : vector<1x64xf32> to vector<1x57xf32>
      %72 = vector.extract_strided_slice %70 {offsets = [0, 0], sizes = [1, 7], strides = [1, 1]} : vector<1x64xf32> to vector<1x7xf32>
      %73 = tpu.concatenate %71, %72 in 1 : vector<1x57xf32>, vector<1x7xf32> -> vector<1x64xf32>
      %74 = arith.addf %66, %73 : vector<1x64xf32>
      %c0_43 = arith.constant 0 : index
      %c7 = arith.constant 7 : index
      %c0_44 = arith.constant 0 : index
      %75 = vector.load %arg7[%c0_43, %c7, %c0_44] : memref<1x16x64xf32, #tpu.memory_space<vmem>>, vector<1x1x64xf32>
      %76 = vector.shape_cast %75 : vector<1x1x64xf32> to vector<1x64xf32>
      %c7_45 = arith.constant 7 : index
      %c0_46 = arith.constant 0 : index
      %77 = vector.load %arg4[%c7_45, %c0_46] : memref<16x64xf32, #tpu.memory_space<vmem>>, vector<1x64xf32>
      %78 = arith.mulf %76, %77 : vector<1x64xf32>
      %79 = vector.extract_strided_slice %78 {offsets = [0, 8], sizes = [1, 56], strides = [1, 1]} : vector<1x64xf32> to vector<1x56xf32>
      %80 = vector.extract_strided_slice %78 {offsets = [0, 0], sizes = [1, 8], strides = [1, 1]} : vector<1x64xf32> to vector<1x8xf32>
      %81 = tpu.concatenate %79, %80 in 1 : vector<1x56xf32>, vector<1x8xf32> -> vector<1x64xf32>
      %82 = arith.addf %74, %81 : vector<1x64xf32>
      %c0_47 = arith.constant 0 : index
      %c8 = arith.constant 8 : index
      %c0_48 = arith.constant 0 : index
      %83 = vector.load %arg7[%c0_47, %c8, %c0_48] : memref<1x16x64xf32, #tpu.memory_space<vmem>>, vector<1x1x64xf32>
      %84 = vector.shape_cast %83 : vector<1x1x64xf32> to vector<1x64xf32>
      %c8_49 = arith.constant 8 : index
      %c0_50 = arith.constant 0 : index
      %85 = vector.load %arg4[%c8_49, %c0_50] : memref<16x64xf32, #tpu.memory_space<vmem>>, vector<1x64xf32>
      %86 = arith.mulf %84, %85 : vector<1x64xf32>
      %87 = vector.extract_strided_slice %86 {offsets = [0, 9], sizes = [1, 55], strides = [1, 1]} : vector<1x64xf32> to vector<1x55xf32>
      %88 = vector.extract_strided_slice %86 {offsets = [0, 0], sizes = [1, 9], strides = [1, 1]} : vector<1x64xf32> to vector<1x9xf32>
      %89 = tpu.concatenate %87, %88 in 1 : vector<1x55xf32>, vector<1x9xf32> -> vector<1x64xf32>
      %90 = arith.addf %82, %89 : vector<1x64xf32>
      %91 = vector.broadcast %20 : f32 to vector<1x64xf32>
      %92 = arith.addf %90, %91 : vector<1x64xf32>
      %cst_51 = arith.constant 0.000000e+00 : f32
      %93 = vector.broadcast %cst_51 : f32 to vector<1x64xf32>
      %94 = arith.maximumf %92, %93 : vector<1x64xf32>
      %cst_52 = arith.constant dense<0.000000e+00> : vector<1xf32>
      %95 = vector.multi_reduction <add>, %94, %cst_52 [1] : vector<1x64xf32> to vector<1xf32>
      %96 = vector.shape_cast %95 : vector<1xf32> to vector<1x1xf32>
      %cst_53 = arith.constant 1.562500e-02 : f32
      %97 = vector.broadcast %cst_53 : f32 to vector<1x1xf32>
      %98 = arith.mulf %96, %97 : vector<1x1xf32>
      %c0_54 = arith.constant 0 : index
      %c0_55 = arith.constant 0 : index
      %c0_56 = arith.constant 0 : index
      %99 = vector.load %arg6[%c0_54, %c0_55, %c0_56] : memref<1x1x1xf32, #tpu.memory_space<vmem>>, vector<1x1x1xf32>
      %100 = vector.shape_cast %99 : vector<1x1x1xf32> to vector<1x1xf32>
      %101 = vector.shape_cast %98 : vector<1x1xf32> to vector<1x1x1xf32>
      tpu.vector_store %arg6[%c0_54, %c0_55, %c0_56], %101 {strides = array<i32>} : memref<1x1x1xf32, #tpu.memory_space<vmem>>, vector<1x1x1xf32>,
    } else {
    }
    return
  }
  func.func @transform_0(%arg0: i32, %arg1: i32) -> (i32, i32, i32) {
    %c0_i32 = arith.constant 0 : i32
    %c0_i32_0 = arith.constant 0 : i32
    return %arg0, %arg1, %c0_i32 : i32, i32, i32
  }
  func.func @transform_1(%arg0: i32, %arg1: i32) -> (i32, i32, i32) {
    %c0_i32 = arith.constant 0 : i32
    %c0_i32_0 = arith.constant 0 : i32
    %c0_i32_1 = arith.constant 0 : i32
    return %arg1, %c0_i32, %c0_i32_0 : i32, i32, i32
  }
  func.func @transform_2(%arg0: i32, %arg1: i32) -> (i32, i32) {
    %c0_i32 = arith.constant 0 : i32
    %c0_i32_0 = arith.constant 0 : i32
    %c0_i32_1 = arith.constant 0 : i32
    return %c0_i32, %c0_i32_0 : i32, i32
  }
  func.func @transform_3(%arg0: i32, %arg1: i32) -> i32 {
    %c0_i32 = arith.constant 0 : i32
    %c0_i32_0 = arith.constant 0 : i32
    return %c0_i32 : i32
  }
  func.func @transform_4(%arg0: i32, %arg1: i32) -> (i32, i32, i32) {
    %c0_i32 = arith.constant 0 : i32
    %c0_i32_0 = arith.constant 0 : i32
    %c0_i32_1 = arith.constant 0 : i32
    return %arg0, %c0_i32, %c0_i32_0 : i32, i32, i32
  }
}

</mosaic_0001>

<bundles_post_ra>
// kernel: tpu_custom_call.1
= control target key start
LH: loop header
LB: loop body
LE: loop exit
PB: predicated region body
PF: predicated region fallthrough
CT: control target
= control target key end

     0   :  { %s2139_s17 = smov 0   ;;  %s2141_s18 = smov 0   ;;  %s2571_s0 = inlined_call_operand.vmem [shape: f32[2,2080,64], index: 0, kind: input, shape index: {}]   ;;  %s2572_s1 = inlined_call_operand.vmem [shape: f32[1,16,2080], index: 1, kind: input, shape index: {}]   ;;  %s2573_s2 = inlined_call_operand.vmem [shape: f32[16,64], index: 2, kind: input, shape index: {}]   ;;  %s2574_s3 = inlined_call_operand.<no memory space> [shape: f32[1], index: 3, kind: input, shape index: {}]   ;;  %s2575_s4 = inlined_call_operand.vmem [shape: f32[2,1,1], index: 4, kind: output, shape index: {}]  }
   0x1   :  { %9 = sst [smem:[#allocation3]] %s2574_s3  ;;  %s2143_s19 = smov 0  }
   0x2 LB: > { %s27_s3 = sadd.s32 1, %s2088_s18  ;;  %p1437_p0 = scmp.ge.s32.totalorder %s2092_s19, 1  ;;  %s2092_s19 = sphi %s2143_s19, %s15_s19   ;;  %s2088_s18 = sphi %s2141_s18, %s2577_s18   ;;  %s2084_s17 = sphi %s2139_s17, %s2576_s17  }
   0x3   : > { %p29_p1 = scmp.ge.s32.totalorder %s27_s3, 2  ;;  %p192_p2 = scmp.lt.s32.totalorder %s2092_s19, 3 }
   0x5   : > { %s2579_s3 = smov (%p29_p1, %s27_s3), 0  ;;  %p193_p3 = pnand %p1437_p0, %p192_p2 }
   0x6   : > { %p226_p4 = scmp.lt.s32.totalorder (!%p193_p3), %s2084_s17, 1  ;;  %v251_v0 = vld [vmem:[%s2572_s1 + $0x8] sm:$0xff] (!%p193_p3)  ;;  %v253_v1 = vld [vmem:[%s2572_s1 + $0x18] sm:$0xff] (!%p193_p3)  ;;  %vm546_vm0 = vcmask (!%p193_p3), 261120   ;;  %vm247_vm1 = vcmask (!%p193_p3), 523264   ;;  %s2095_s29 = smov (!%p193_p3), 72  }
   0x7   : > { %196 = sbr.rel (%p193_p3) target bundleno = 681 (0x2a9), region = 36  ;;  %617 = vmatprep.mubr.f32.mxu0 (!%p193_p3), %v251_v0  ;;  %692 = vmatprep.mubr.f32.mxu1 (!%p193_p3), %v253_v1  ;;  %s2096_s30 = smov (!%p193_p3), 73   ;;  %vm1260_vm2 = vcmask (!%p193_p3), 64512   ;;  %vm1247_vm3 = vcmask (!%p193_p3), 72704   ;;  %vm1273_vm4 = vcmask (!%p193_p3), 56320   ;;  %vm1286_vm5 = vcmask (!%p193_p3), 7168  }
   0x8   : > { %s2097_s7 = smov (!%p193_p3), 8   ;;  %s2098_s8 = smov (!%p193_p3), 9   ;;  %vm1303_vm6 = vcmask (!%p193_p3), 515072   ;;  %vm1316_vm7 = vcmask (!%p193_p3), 465920   ;;  %vm1329_vm8 = vcmask (!%p193_p3), 457728   ;;  %vm1342_vm9 = vcmask (!%p193_p3), 449536  }
   0x9   : > { %s2099_s11 = smov (!%p193_p3), 7   ;;  %s2100_s12 = smov (!%p193_p3), 71   ;;  %vm1348_vm10 = vcmask (!%p193_p3), 516096   ;;  %vm1353_vm11 = vcmask (!%p193_p3), 0  }
   0xa   : > { %s2101_s14 = smov (!%p193_p3), 1   ;;  %s2102_s15 = smov (!%p193_p3), 65  }
   0xb   : > { %s2103_s21 = smov (!%p193_p3), 63   ;;  %s2104_s22 = smov (!%p193_p3), 127  }
   0xc   : > { %s2105_s25 = smov (!%p193_p3), 57   ;;  %s2106_s26 = smov (!%p193_p3), 121  }
   0xd   : > { %s2108_s5 = smov (!%p193_p3), 120   ;;  %s2109_s6 = smov (!%p193_p3), 55  }
   0xe   : > { %s2581_s17 = smov (!%p226_p4, %s2084_s17), 1  ;;  %s1236_s10 = sld [smem:[#allocation3]] }
   0xf   : > { %s2028_s24 = smul.u32 2080, %s2581_s17  ;;  %s242_s13 = scalar_lea.vmem %s2575_s4, %s2581_s17 }
  0x11   : > { %s2169_s27 = scalar_lea.vmem %s2571_s0, %s2028_s24 }
  0x12   : > { %v302_v2 = vld [vmem:[%s2169_s27 + $0x80] sm:$0xff]  ;;  %v303_v3 = vld [vmem:[%s2169_s27 + $0x88] sm:$0xff]  ;;  %v304_v13 = vld [vmem:[%s2169_s27 + $0x90] sm:$0xff] }
  0x13   : > { %v334_v4 = vld [vmem:[%s2169_s27 + $0x180] sm:$0xff]  ;;  %v1764_v5 = vpack.c.bf16 %v303_v3, %v302_v2  ;;  %v335_v6 = vld [vmem:[%s2169_s27 + $0x188] sm:$0xff]  ;;  %v305_v15 = vld [vmem:[%s2169_s27 + $0x98] sm:$0xff] }
  0x14   : > { %v286_v7 = vld [vmem:[%s2169_s27] sm:$0xff]  ;;  %v287_v8 = vld [vmem:[%s2169_s27 + $0x8] sm:$0xff]  ;;  %v1796_v9 = vpack.c.bf16 %v335_v6, %v334_v4  ;;  %v336_v16 = vld [vmem:[%s2169_s27 + $0x190] sm:$0xff]  ;;  %v1768_v18 = vpack.c.bf16 %v305_v15, %v304_v13 }
  0x15   : > { %v1766_v10 = vpack.c.bf16 %v287_v8, %v286_v7  ;;  %v318_v11 = vld [vmem:[%s2169_s27 + $0x100] sm:$0xff]  ;;  %v319_v12 = vld [vmem:[%s2169_s27 + $0x108] sm:$0xff]  ;;  %1765 = vmatprep.subr.bf16.mxu0 %v1764_v5  ;;  %v337_v17 = vld [vmem:[%s2169_s27 + $0x198] sm:$0xff] }
  0x16   : > { %v1798_v14 = vpack.c.bf16 %v319_v12, %v318_v11  ;;  %1797 = vmatprep.subr.bf16.mxu1 %v1796_v9  ;;  %v1800_v19 = vpack.c.bf16 %v337_v17, %v336_v16  ;;  %v288_v20 = vld [vmem:[%s2169_s27 + $0x10] sm:$0xff]  ;;  %v289_v21 = vld [vmem:[%s2169_s27 + $0x18] sm:$0xff]  ;;  %v306_v25 = vld [vmem:[%s2169_s27 + $0xa0] sm:$0xff] }
  0x17   : > { %1767 = vmatpush3.bf16.msra.mxu0 %v1766_v10  ;;  %v320_v22 = vld [vmem:[%s2169_s27 + $0x110] sm:$0xff]  ;;  %v1770_v23 = vpack.c.bf16 %v289_v21, %v288_v20  ;;  %v321_v24 = vld [vmem:[%s2169_s27 + $0x118] sm:$0xff]  ;;  %v307_v26 = vld [vmem:[%s2169_s27 + $0xa8] sm:$0xff] }
  0x18   : > { %1799 = vmatpush3.bf16.msra.mxu1 %v1798_v14  ;;  %1769 = vmatprep.subr.bf16.mxu0 %v1768_v18  ;;  %v1802_v27 = vpack.c.bf16 %v321_v24, %v320_v22  ;;  %v1772_v28 = vpack.c.bf16 %v307_v26, %v306_v25  ;;  %v338_v29 = vld [vmem:[%s2169_s27 + $0x1a0] sm:$0xff]  ;;  %v339_v30 = vld [vmem:[%s2169_s27 + $0x1a8] sm:$0xff]  ;;  %v308_v37 = vld [vmem:[%s2169_s27 + $0xb0] sm:$0xff] }
  0x19   : > { %1801 = vmatprep.subr.bf16.mxu1 %v1800_v19  ;;  %v290_v31 = vld [vmem:[%s2169_s27 + $0x20] sm:$0xff]  ;;  %v1804_v32 = vpack.c.bf16 %v339_v30, %v338_v29  ;;  %v291_v33 = vld [vmem:[%s2169_s27 + $0x28] sm:$0xff]  ;;  %v309_v38 = vld [vmem:[%s2169_s27 + $0xb8] sm:$0xff] }
  0x1a   : > { %v322_v34 = vld [vmem:[%s2169_s27 + $0x120] sm:$0xff]  ;;  %v323_v35 = vld [vmem:[%s2169_s27 + $0x128] sm:$0xff]  ;;  %v1774_v36 = vpack.c.bf16 %v291_v33, %v290_v31  ;;  %v340_v39 = vld [vmem:[%s2169_s27 + $0x1b0] sm:$0xff]  ;;  %v1776_v41 = vpack.c.bf16 %v309_v38, %v308_v37 }
  0x1b   : > { %1771 = vmatpush3.bf16.msra.mxu0 %v1770_v23  ;;  %v1806_v40 = vpack.c.bf16 %v323_v35, %v322_v34  ;;  %v341_v42 = vld [vmem:[%s2169_s27 + $0x1b8] sm:$0xff]  ;;  %v292_v43 = vld [vmem:[%s2169_s27 + $0x30] sm:$0xff]  ;;  %v310_v48 = vld [vmem:[%s2169_s27 + $0xc0] sm:$0xff] }
  0x1c   : > { %1803 = vmatpush3.bf16.msra.mxu1 %v1802_v27  ;;  %1773 = vmatprep.subr.bf16.mxu0 %v1772_v28  ;;  %v293_v44 = vld [vmem:[%s2169_s27 + $0x38] sm:$0xff]  ;;  %v1808_v45 = vpack.c.bf16 %v341_v42, %v340_v39  ;;  %v324_v46 = vld [vmem:[%s2169_s27 + $0x130] sm:$0xff]  ;;  %v311_v49 = vld [vmem:[%s2169_s27 + $0xc8] sm:$0xff] }
  0x1d   : > { %1805 = vmatprep.subr.bf16.mxu1 %v1804_v32  ;;  %v325_v47 = vld [vmem:[%s2169_s27 + $0x138] sm:$0xff]  ;;  %v342_v50 = vld [vmem:[%s2169_s27 + $0x1c0] sm:$0xff]  ;;  %v343_v51 = vld [vmem:[%s2169_s27 + $0x1c8] sm:$0xff]  ;;  %v1778_v52 = vpack.c.bf16 %v293_v44, %v292_v43  ;;  %v1780_v54 = vpack.c.bf16 %v311_v49, %v310_v48 }
  0x1e   : > { %v1810_v53 = vpack.c.bf16 %v325_v47, %v324_v46  ;;  %v294_v55 = vld [vmem:[%s2169_s27 + $0x40] sm:$0xff]  ;;  %v295_v56 = vld [vmem:[%s2169_s27 + $0x48] sm:$0xff]  ;;  %v1812_v58 = vpack.c.bf16 %v343_v51, %v342_v50  ;;  %v312_v60 = vld [vmem:[%s2169_s27 + $0xd0] sm:$0xff] }
  0x1f   : > { %1775 = vmatpush3.bf16.msra.mxu0 %v1774_v36  ;;  %v326_v57 = vld [vmem:[%s2169_s27 + $0x140] sm:$0xff]  ;;  %v327_v59 = vld [vmem:[%s2169_s27 + $0x148] sm:$0xff]  ;;  %v313_v61 = vld [vmem:[%s2169_s27 + $0xd8] sm:$0xff]  ;;  %v1782_v0 = vpack.c.bf16 %v295_v56, %v294_v55 }
  0x20   : > { %1807 = vmatpush3.bf16.msra.mxu1 %v1806_v40  ;;  %1777 = vmatprep.subr.bf16.mxu0 %v1776_v41  ;;  %v344_v62 = vld [vmem:[%s2169_s27 + $0x1d0] sm:$0xff]  ;;  %v345_v63 = vld [vmem:[%s2169_s27 + $0x1d8] sm:$0xff]  ;;  %v1814_v1 = vpack.c.bf16 %v327_v59, %v326_v57  ;;  %v1784_v2 = vpack.c.bf16 %v313_v61, %v312_v60  ;;  %v314_v8 = vld [vmem:[%s2169_s27 + $0xe0] sm:$0xff] }
  0x21   : > { %1809 = vmatprep.subr.bf16.mxu1 %v1808_v45  ;;  %v296_v3 = vld [vmem:[%s2169_s27 + $0x50] sm:$0xff]  ;;  %v297_v4 = vld [vmem:[%s2169_s27 + $0x58] sm:$0xff]  ;;  %v1816_v6 = vpack.c.bf16 %v345_v63, %v344_v62  ;;  %v315_v9 = vld [vmem:[%s2169_s27 + $0xe8] sm:$0xff] }
  0x22   : > { %v328_v5 = vld [vmem:[%s2169_s27 + $0x150] sm:$0xff]  ;;  %v329_v7 = vld [vmem:[%s2169_s27 + $0x158] sm:$0xff]  ;;  %v346_v10 = vld [vmem:[%s2169_s27 + $0x1e0] sm:$0xff]  ;;  %v1786_v12 = vpack.c.bf16 %v297_v4, %v296_v3  ;;  %v1788_v14 = vpack.c.bf16 %v315_v9, %v314_v8 }
  0x23   : > { %1779 = vmatpush3.bf16.msra.mxu0 %v1778_v52  ;;  %v347_v11 = vld [vmem:[%s2169_s27 + $0x1e8] sm:$0xff]  ;;  %v1818_v13 = vpack.c.bf16 %v329_v7, %v328_v5  ;;  %v298_v15 = vld [vmem:[%s2169_s27 + $0x60] sm:$0xff]  ;;  %v316_v20 = vld [vmem:[%s2169_s27 + $0xf0] sm:$0xff] }
  0x24   : > { %1811 = vmatpush3.bf16.msra.mxu1 %v1810_v53  ;;  %1781 = vmatprep.subr.bf16.mxu0 %v1780_v54  ;;  %v299_v16 = vld [vmem:[%s2169_s27 + $0x68] sm:$0xff]  ;;  %v330_v17 = vld [vmem:[%s2169_s27 + $0x160] sm:$0xff]  ;;  %v1820_v18 = vpack.c.bf16 %v347_v11, %v346_v10  ;;  %v317_v21 = vld [vmem:[%s2169_s27 + $0xf8] sm:$0xff] }
  0x25   : > { %1813 = vmatprep.subr.bf16.mxu1 %v1812_v58  ;;  %v331_v19 = vld [vmem:[%s2169_s27 + $0x168] sm:$0xff]  ;;  %v348_v22 = vld [vmem:[%s2169_s27 + $0x1f0] sm:$0xff]  ;;  %v349_v23 = vld [vmem:[%s2169_s27 + $0x1f8] sm:$0xff]  ;;  %v1790_v24 = vpack.c.bf16 %v299_v16, %v298_v15  ;;  %v1792_v26 = vpack.c.bf16 %v317_v21, %v316_v20 }
  0x26   : > { %v1822_v25 = vpack.c.bf16 %v331_v19, %v330_v17  ;;  %v300_v27 = vld [vmem:[%s2169_s27 + $0x70] sm:$0xff]  ;;  %v301_v28 = vld [vmem:[%s2169_s27 + $0x78] sm:$0xff]  ;;  %v1824_v30 = vpack.c.bf16 %v349_v23, %v348_v22  ;;  %v366_v32 = vld [vmem:[%s2169_s27 + $0x280] sm:$0xff] }
  0x27   : > { %1783 = vmatpush3.bf16.msra.mxu0 %v1782_v0  ;;  %v332_v29 = vld [vmem:[%s2169_s27 + $0x170] sm:$0xff]  ;;  %v333_v31 = vld [vmem:[%s2169_s27 + $0x178] sm:$0xff]  ;;  %v367_v33 = vld [vmem:[%s2169_s27 + $0x288] sm:$0xff]  ;;  %v1794_v36 = vpack.c.bf16 %v301_v28, %v300_v27 }
  0x28   : > { %1815 = vmatpush3.bf16.msra.mxu1 %v1814_v1  ;;  %1785 = vmatprep.subr.bf16.mxu0 %v1784_v2  ;;  %v398_v34 = vld [vmem:[%s2169_s27 + $0x380] sm:$0xff]  ;;  %v399_v35 = vld [vmem:[%s2169_s27 + $0x388] sm:$0xff]  ;;  %v1826_v37 = vpack.c.bf16 %v333_v31, %v332_v29  ;;  %v1828_v38 = vpack.c.bf16 %v367_v33, %v366_v32  ;;  %v368_v44 = vld [vmem:[%s2169_s27 + $0x290] sm:$0xff] }
  0x29   : > { %1817 = vmatprep.subr.bf16.mxu1 %v1816_v6  ;;  %v350_v39 = vld [vmem:[%s2169_s27 + $0x200] sm:$0xff]  ;;  %v351_v40 = vld [vmem:[%s2169_s27 + $0x208] sm:$0xff]  ;;  %v1860_v42 = vpack.c.bf16 %v399_v35, %v398_v34  ;;  %v369_v45 = vld [vmem:[%s2169_s27 + $0x298] sm:$0xff] }
  0x2a   : > { %v382_v41 = vld [vmem:[%s2169_s27 + $0x300] sm:$0xff]  ;;  %v383_v43 = vld [vmem:[%s2169_s27 + $0x308] sm:$0xff]  ;;  %v400_v46 = vld [vmem:[%s2169_s27 + $0x390] sm:$0xff]  ;;  %v1830_v50 = vpack.c.bf16 %v351_v40, %v350_v39  ;;  %v1832_v52 = vpack.c.bf16 %v369_v45, %v368_v44 }
  0x2b   : > { %1787 = vmatpush3.bf16.msra.mxu0 %v1786_v12  ;;  %v401_v47 = vld [vmem:[%s2169_s27 + $0x398] sm:$0xff]  ;;  %v250_v48 = vld [vmem:[%s2572_s1] sm:$0xff]  ;;  %v252_v49 = vld [vmem:[%s2572_s1 + $0x10] sm:$0xff]  ;;  %v1862_v51 = vpack.c.bf16 %v383_v43, %v382_v41 }
  0x2c   : > { %1819 = vmatpush3.bf16.msra.mxu1 %v1818_v13  ;;  %1789 = vmatprep.subr.bf16.mxu0 %v1788_v14  ;;  %v352_v53 = vld [vmem:[%s2169_s27 + $0x210] sm:$0xff]  ;;  %v353_v54 = vld [vmem:[%s2169_s27 + $0x218] sm:$0xff]  ;;  %v1864_v56 = vpack.c.bf16 %v401_v47, %v400_v46  ;;  %v370_v58 = vld [vmem:[%s2169_s27 + $0x2a0] sm:$0xff] }
  0x2d   : > { %1821 = vmatprep.subr.bf16.mxu1 %v1820_v18  ;;  %v384_v55 = vld [vmem:[%s2169_s27 + $0x310] sm:$0xff]  ;;  %v385_v57 = vld [vmem:[%s2169_s27 + $0x318] sm:$0xff]  ;;  %v371_v59 = vld [vmem:[%s2169_s27 + $0x2a8] sm:$0xff]  ;;  %v1834_v63 = vpack.c.bf16 %v353_v54, %v352_v53 }
  0x2e   : > { %v402_v60 = vld [vmem:[%s2169_s27 + $0x3a0] sm:$0xff]  ;;  %v403_v61 = vld [vmem:[%s2169_s27 + $0x3a8] sm:$0xff]  ;;  %v268_v62 = vld [vmem:[%s2572_s1 + $0x90] sm:$0xff]  ;;  %v1866_v3 = vpack.c.bf16 %v385_v57, %v384_v55  ;;  %v1836_v4 = vpack.c.bf16 %v371_v59, %v370_v58 }
  0x2f   : > { %1791 = vmatpush3.bf16.msra.mxu0 %v1790_v24  ;;  %v270_v0 = vld [vmem:[%s2572_s1 + $0xa0] sm:$0xff]  ;;  %v267_v1 = vld [vmem:[%s2572_s1 + $0x88] sm:$0xff]  ;;  %v269_v2 = vld [vmem:[%s2572_s1 + $0x98] sm:$0xff]  ;;  %v1868_v8 = vpack.c.bf16 %v403_v61, %v402_v60 }
  0x30   : > { %1823 = vmatpush3.bf16.msra.mxu1 %v1822_v25  ;;  %1793 = vmatprep.subr.bf16.mxu0 %v1792_v26  ;;  %v354_v5 = vld [vmem:[%s2169_s27 + $0x220] sm:$0xff]  ;;  %v355_v6 = vld [vmem:[%s2169_s27 + $0x228] sm:$0xff]  ;;  %v372_v10 = vld [vmem:[%s2169_s27 + $0x2b0] sm:$0xff] }
  0x31   : > { %1825 = vmatprep.subr.bf16.mxu1 %v1824_v30  ;;  %v386_v7 = vld [vmem:[%s2169_s27 + $0x320] sm:$0xff]  ;;  %v387_v9 = vld [vmem:[%s2169_s27 + $0x328] sm:$0xff]  ;;  %v373_v11 = vld [vmem:[%s2169_s27 + $0x2b8] sm:$0xff]  ;;  %v1838_v15 = vpack.c.bf16 %v355_v6, %v354_v5 }
  0x32   : > { %v404_v12 = vld [vmem:[%s2169_s27 + $0x3b0] sm:$0xff]  ;;  %v405_v13 = vld [vmem:[%s2169_s27 + $0x3b8] sm:$0xff]  ;;  %v255_v14 = vld [vmem:[%s2572_s1 + $0x28] sm:$0xff]  ;;  %v1870_v17 = vpack.c.bf16 %v387_v9, %v386_v7  ;;  %v1840_v18 = vpack.c.bf16 %v373_v11, %v372_v10 }
  0x33   : > { %1795 = vmatpush3.bf16.msra.mxu0 %v1794_v36  ;;  %v257_v16 = vld [vmem:[%s2572_s1 + $0x38] sm:$0xff]  ;;  %v356_v19 = vld [vmem:[%s2169_s27 + $0x230] sm:$0xff]  ;;  %v1872_v22 = vpack.c.bf16 %v405_v13, %v404_v12  ;;  %v374_v24 = vld [vmem:[%s2169_s27 + $0x2c0] sm:$0xff] }
  0x34   : > { %1827 = vmatpush3.bf16.msra.mxu1 %v1826_v37  ;;  %1829 = vmatprep.subr.bf16.mxu0 %v1828_v38  ;;  %v357_v20 = vld [vmem:[%s2169_s27 + $0x238] sm:$0xff]  ;;  %v388_v21 = vld [vmem:[%s2169_s27 + $0x330] sm:$0xff]  ;;  %v375_v25 = vld [vmem:[%s2169_s27 + $0x2c8] sm:$0xff] }
  0x35   : > { %1861 = vmatprep.subr.bf16.mxu1 %v1860_v42  ;;  %v389_v23 = vld [vmem:[%s2169_s27 + $0x338] sm:$0xff]  ;;  %v406_v26 = vld [vmem:[%s2169_s27 + $0x3c0] sm:$0xff]  ;;  %v407_v27 = vld [vmem:[%s2169_s27 + $0x3c8] sm:$0xff]  ;;  %v1842_v28 = vpack.c.bf16 %v357_v20, %v356_v19  ;;  %v1844_v30 = vpack.c.bf16 %v375_v25, %v374_v24 }
  0x36   : > { %618 = vmatmul.mubr.f32.vlgmr.msra.gmra.mrb[0].mxu0 %v250_v48  ;;  %v1874_v29 = vpack.c.bf16 %v389_v23, %v388_v21  ;;  %v358_v31 = vld [vmem:[%s2169_s27 + $0x240] sm:$0xff]  ;;  %v359_v32 = vld [vmem:[%s2169_s27 + $0x248] sm:$0xff]  ;;  %v1876_v34 = vpack.c.bf16 %v407_v27, %v406_v26  ;;  %v376_v36 = vld [vmem:[%s2169_s27 + $0x2d0] sm:$0xff] }
  0x37   : > { %693 = vmatmul.mubr.f32.vlgmr.msra.gmra.mrb[0].mxu1 %v252_v49  ;;  %1831 = vmatpush3.bf16.msra.mxu0 %v1830_v50  ;;  %v390_v33 = vld [vmem:[%s2169_s27 + $0x340] sm:$0xff]  ;;  %v391_v35 = vld [vmem:[%s2169_s27 + $0x348] sm:$0xff]  ;;  %v377_v37 = vld [vmem:[%s2169_s27 + $0x2d8] sm:$0xff]  ;;  %v1846_v40 = vpack.c.bf16 %v359_v32, %v358_v31 }
  0x38   : > { %1863 = vmatpush3.bf16.msra.mxu1 %v1862_v51  ;;  %1833 = vmatprep.subr.bf16.mxu0 %v1832_v52  ;;  %v408_v38 = vld [vmem:[%s2169_s27 + $0x3d0] sm:$0xff]  ;;  %v409_v39 = vld [vmem:[%s2169_s27 + $0x3d8] sm:$0xff]  ;;  %v1878_v41 = vpack.c.bf16 %v391_v35, %v390_v33  ;;  %v1848_v42 = vpack.c.bf16 %v377_v37, %v376_v36  ;;  %v378_v48 = vld [vmem:[%s2169_s27 + $0x2e0] sm:$0xff] }
  0x39   : > { %1865 = vmatprep.subr.bf16.mxu1 %v1864_v56  ;;  %622 = vmatprep.mubr.f32.mxu0 %v268_v62  ;;  %v360_v43 = vld [vmem:[%s2169_s27 + $0x250] sm:$0xff]  ;;  %v361_v44 = vld [vmem:[%s2169_s27 + $0x258] sm:$0xff]  ;;  %v1880_v46 = vpack.c.bf16 %v409_v39, %v408_v38  ;;  %v379_v49 = vld [vmem:[%s2169_s27 + $0x2e8] sm:$0xff] }
  0x3a   : > { %697 = vmatprep.mubr.f32.mxu1 %v270_v0  ;;  %623 = vmatmul.mubr.f32.gmra.mrb[2].mxu0 %v267_v1  ;;  %v392_v45 = vld [vmem:[%s2169_s27 + $0x350] sm:$0xff]  ;;  %v393_v47 = vld [vmem:[%s2169_s27 + $0x358] sm:$0xff]  ;;  %v410_v50 = vld [vmem:[%s2169_s27 + $0x3e0] sm:$0xff]  ;;  %v1850_v52 = vpack.c.bf16 %v361_v44, %v360_v43  ;;  %v1852_v54 = vpack.c.bf16 %v379_v49, %v378_v48 }
  0x3b   : > { %1835 = vmatpush3.bf16.msra.mxu0 %v1834_v63  ;;  %698 = vmatmul.mubr.f32.gmra.mrb[2].mxu1 %v269_v2  ;;  %v411_v51 = vld [vmem:[%s2169_s27 + $0x3e8] sm:$0xff]  ;;  %v1882_v53 = vpack.c.bf16 %v393_v47, %v392_v45  ;;  %v362_v55 = vld [vmem:[%s2169_s27 + $0x260] sm:$0xff]  ;;  %v380_v60 = vld [vmem:[%s2169_s27 + $0x2f0] sm:$0xff] }
  0x3c   : > { %1867 = vmatpush3.bf16.msra.mxu1 %v1866_v3  ;;  %1837 = vmatprep.subr.bf16.mxu0 %v1836_v4  ;;  %v363_v56 = vld [vmem:[%s2169_s27 + $0x268] sm:$0xff]  ;;  %v394_v57 = vld [vmem:[%s2169_s27 + $0x360] sm:$0xff]  ;;  %v1884_v58 = vpack.c.bf16 %v411_v51, %v410_v50  ;;  %v381_v61 = vld [vmem:[%s2169_s27 + $0x2f8] sm:$0xff] }
  0x3d   : > { %1869 = vmatprep.subr.bf16.mxu1 %v1868_v8  ;;  %767 = vmatprep.mubr.f32.mxu0 %v255_v14  ;;  %v395_v59 = vld [vmem:[%s2169_s27 + $0x368] sm:$0xff]  ;;  %v412_v62 = vld [vmem:[%s2169_s27 + $0x3f0] sm:$0xff]  ;;  %v413_v63 = vld [vmem:[%s2169_s27 + $0x3f8] sm:$0xff]  ;;  %v1854_v0 = vpack.c.bf16 %v363_v56, %v362_v55  ;;  %v1856_v2 = vpack.c.bf16 %v381_v61, %v380_v60 }
  0x3e   : > { %842 = vmatprep.mubr.f32.mxu1 %v257_v16  ;;  %v1886_v1 = vpack.c.bf16 %v395_v59, %v394_v57  ;;  %v364_v3 = vld [vmem:[%s2169_s27 + $0x270] sm:$0xff]  ;;  %v365_v4 = vld [vmem:[%s2169_s27 + $0x278] sm:$0xff]  ;;  %v1888_v6 = vpack.c.bf16 %v413_v63, %v412_v62  ;;  %v430_v8 = vld [vmem:[%s2169_s27 + $0x480] sm:$0xff] }
  0x3f   : > { %1839 = vmatpush3.bf16.msra.mxu0 %v1838_v15  ;;  %v396_v5 = vld [vmem:[%s2169_s27 + $0x370] sm:$0xff]  ;;  %v397_v7 = vld [vmem:[%s2169_s27 + $0x378] sm:$0xff]  ;;  %v431_v9 = vld [vmem:[%s2169_s27 + $0x488] sm:$0xff]  ;;  %v1858_v12 = vpack.c.bf16 %v365_v4, %v364_v3 }
  0x40   : > { %1871 = vmatpush3.bf16.msra.mxu1 %v1870_v17  ;;  %1841 = vmatprep.subr.bf16.mxu0 %v1840_v18  ;;  %v462_v10 = vld [vmem:[%s2169_s27 + $0x580] sm:$0xff]  ;;  %v463_v11 = vld [vmem:[%s2169_s27 + $0x588] sm:$0xff]  ;;  %v1890_v13 = vpack.c.bf16 %v397_v7, %v396_v5  ;;  %v1892_v14 = vpack.c.bf16 %v431_v9, %v430_v8  ;;  %v256_v21 = vld [vmem:[%s2572_s1 + $0x30] sm:$0xff] }
  0x41   : > { %1873 = vmatprep.subr.bf16.mxu1 %v1872_v22  ;;  %v414_v15 = vld [vmem:[%s2169_s27 + $0x400] sm:$0xff]  ;;  %v415_v16 = vld [vmem:[%s2169_s27 + $0x408] sm:$0xff]  ;;  %v1924_v18 = vpack.c.bf16 %v463_v11, %v462_v10  ;;  %v432_v22 = vld [vmem:[%s2169_s27 + $0x490] sm:$0xff] }
  0x42   : > { %v254_v17 = vld [vmem:[%s2572_s1 + $0x20] sm:$0xff]  ;;  %v447_v20 = vld [vmem:[%s2169_s27 + $0x508] sm:$0xff]  ;;  %v433_v23 = vld [vmem:[%s2169_s27 + $0x498] sm:$0xff]  ;;  %v1894_v24 = vpack.c.bf16 %v415_v16, %v414_v15 }
  0x43   : > { %1843 = vmatpush3.bf16.msra.mxu0 %v1842_v28  ;;  %v446_v19 = vld [vmem:[%s2169_s27 + $0x500] sm:$0xff]  ;;  %v272_v25 = vld [vmem:[%s2572_s1 + $0xb0] sm:$0xff]  ;;  %v465_v27 = vld [vmem:[%s2169_s27 + $0x598] sm:$0xff]  ;;  %v1896_v32 = vpack.c.bf16 %v433_v23, %v432_v22 }
  0x44   : > { %1875 = vmatpush3.bf16.msra.mxu1 %v1874_v29  ;;  %1845 = vmatprep.subr.bf16.mxu0 %v1844_v30  ;;  %v464_v26 = vld [vmem:[%s2169_s27 + $0x590] sm:$0xff]  ;;  %v1926_v28 = vpack.c.bf16 %v447_v20, %v446_v19  ;;  %v417_v30 = vld [vmem:[%s2169_s27 + $0x418] sm:$0xff]  ;;  %v435_v35 = vld [vmem:[%s2169_s27 + $0x4a8] sm:$0xff] }
  0x45   : > { %1877 = vmatprep.subr.bf16.mxu1 %v1876_v34  ;;  %v416_v29 = vld [vmem:[%s2169_s27 + $0x410] sm:$0xff]  ;;  %v449_v33 = vld [vmem:[%s2169_s27 + $0x518] sm:$0xff]  ;;  %v434_v34 = vld [vmem:[%s2169_s27 + $0x4a0] sm:$0xff]  ;;  %v1928_v37 = vpack.c.bf16 %v465_v27, %v464_v26 }
  0x46   : > { %v448_v31 = vld [vmem:[%s2169_s27 + $0x510] sm:$0xff]  ;;  %v274_v36 = vld [vmem:[%s2572_s1 + $0xc0] sm:$0xff]  ;;  %v467_v39 = vld [vmem:[%s2169_s27 + $0x5a8] sm:$0xff]  ;;  %v1900_v44 = vpack.c.bf16 %v435_v35, %v434_v34 }
  0x47   : > { %1847 = vmatpush3.bf16.msra.mxu0 %v1846_v40  ;;  %v466_v38 = vld [vmem:[%s2169_s27 + $0x5a0] sm:$0xff]  ;;  %v271_v40 = vld [vmem:[%s2572_s1 + $0xa8] sm:$0xff]  ;;  %v1930_v43 = vpack.c.bf16 %v449_v33, %v448_v31  ;;  %v436_v50 = vld [vmem:[%s2169_s27 + $0x4b0] sm:$0xff] }
  0x48   : > { %1879 = vmatpush3.bf16.msra.mxu1 %v1878_v41  ;;  %1849 = vmatprep.subr.bf16.mxu0 %v1848_v42  ;;  %v1898_v41 = vpack.c.bf16 %v417_v30, %v416_v29  ;;  %v273_v42 = vld [vmem:[%s2572_s1 + $0xb8] sm:$0xff]  ;;  %v418_v45 = vld [vmem:[%s2169_s27 + $0x420] sm:$0xff]  ;;  %v1932_v48 = vpack.c.bf16 %v467_v39, %v466_v38  ;;  %v451_v49 = vld [vmem:[%s2169_s27 + $0x528] sm:$0xff] }
  0x49   : > { %1881 = vmatprep.subr.bf16.mxu1 %v1880_v46  ;;  %v419_v46 = vld [vmem:[%s2169_s27 + $0x428] sm:$0xff]  ;;  %v450_v47 = vld [vmem:[%s2169_s27 + $0x520] sm:$0xff]  ;;  %v437_v51 = vld [vmem:[%s2169_s27 + $0x4b8] sm:$0xff] }
  0x4a   : > { %v1902_v55 = vpack.c.bf16 %v419_v46, %v418_v45  ;;  %v261_v56 = vld [vmem:[%s2572_s1 + $0x58] sm:$0xff]  ;;  %v1934_v57 = vpack.c.bf16 %v451_v49, %v450_v47  ;;  %v420_v59 = vld [vmem:[%s2169_s27 + $0x430] sm:$0xff]  ;;  %v471_v3 = vld [vmem:[%s2169_s27 + $0x5c8] sm:$0xff] }
  0x4b   : > { %1851 = vmatpush3.bf16.msra.mxu0 %v1850_v52  ;;  %v468_v52 = vld [vmem:[%s2169_s27 + $0x5b0] sm:$0xff]  ;;  %v421_v60 = vld [vmem:[%s2169_s27 + $0x438] sm:$0xff]  ;;  %v422_v7 = vld [vmem:[%s2169_s27 + $0x440] sm:$0xff] }
  0x4c   : > { %1883 = vmatpush3.bf16.msra.mxu1 %v1882_v53  ;;  %1853 = vmatprep.subr.bf16.mxu0 %v1852_v54  ;;  %v469_v53 = vld [vmem:[%s2169_s27 + $0x5b8] sm:$0xff]  ;;  %v259_v54 = vld [vmem:[%s2572_s1 + $0x48] sm:$0xff]  ;;  %v452_v61 = vld [vmem:[%s2169_s27 + $0x530] sm:$0xff]  ;;  %v1906_v4 = vpack.c.bf16 %v421_v60, %v420_v59 }
  0x4d   : > { %1885 = vmatprep.subr.bf16.mxu1 %v1884_v58  ;;  %v1904_v58 = vpack.c.bf16 %v437_v51, %v436_v50  ;;  %v1936_v62 = vpack.c.bf16 %v469_v53, %v468_v52  ;;  %v453_v63 = vld [vmem:[%s2169_s27 + $0x538] sm:$0xff]  ;;  %v423_v8 = vld [vmem:[%s2169_s27 + $0x448] sm:$0xff]  ;;  %v454_v9 = vld [vmem:[%s2169_s27 + $0x540] sm:$0xff] }
  0x4e   : > { %v1938_v5 = vpack.c.bf16 %v453_v63, %v452_v61  ;;  %v455_v11 = vld [vmem:[%s2169_s27 + $0x548] sm:$0xff]  ;;  %v473_v15 = vld [vmem:[%s2169_s27 + $0x5d8] sm:$0xff]  ;;  %v1910_v16 = vpack.c.bf16 %v423_v8, %v422_v7  ;;  %v424_v19 = vld [vmem:[%s2169_s27 + $0x450] sm:$0xff] }
  0x4f   : > { %1855 = vmatpush3.bf16.msra.mxu0 %v1854_v0  ;;  %v438_v0 = vld [vmem:[%s2169_s27 + $0x4c0] sm:$0xff]  ;;  %v425_v20 = vld [vmem:[%s2169_s27 + $0x458] sm:$0xff]  ;;  %v475_v27 = vld [vmem:[%s2169_s27 + $0x5e8] sm:$0xff] }
  0x50   : > { %1887 = vmatpush3.bf16.msra.mxu1 %v1886_v1  ;;  %1857 = vmatprep.subr.bf16.mxu0 %v1856_v2  ;;  %v439_v1 = vld [vmem:[%s2169_s27 + $0x4c8] sm:$0xff]  ;;  %v470_v2 = vld [vmem:[%s2169_s27 + $0x5c0] sm:$0xff]  ;;  %v457_v23 = vld [vmem:[%s2169_s27 + $0x558] sm:$0xff] }
  0x51   : > { %1889 = vmatprep.subr.bf16.mxu1 %v1888_v6  ;;  %v1908_v6 = vpack.c.bf16 %v439_v1, %v438_v0  ;;  %v1940_v10 = vpack.c.bf16 %v471_v3, %v470_v2  ;;  %v474_v26 = vld [vmem:[%s2169_s27 + $0x5e0] sm:$0xff]  ;;  %v459_v35 = vld [vmem:[%s2169_s27 + $0x568] sm:$0xff]  ;;  %v476_v38 = vld [vmem:[%s2169_s27 + $0x5f0] sm:$0xff] }
  0x52   : > { %v426_v31 = vld [vmem:[%s2169_s27 + $0x460] sm:$0xff]  ;;  %v1948_v34 = vpack.c.bf16 %v475_v27, %v474_v26  ;;  %v477_v39 = vld [vmem:[%s2169_s27 + $0x5f8] sm:$0xff]  ;;  %v460_v45 = vld [vmem:[%s2169_s27 + $0x570] sm:$0xff] }
  0x53   : > { %1859 = vmatpush3.bf16.msra.mxu0 %v1858_v12  ;;  %v440_v12 = vld [vmem:[%s2169_s27 + $0x4d0] sm:$0xff]  ;;  %v458_v33 = vld [vmem:[%s2169_s27 + $0x560] sm:$0xff]  ;;  %v1952_v46 = vpack.c.bf16 %v477_v39, %v476_v38  ;;  %v461_v47 = vld [vmem:[%s2169_s27 + $0x578] sm:$0xff] }
  0x54   : > { %1891 = vmatpush3.bf16.msra.mxu1 %v1890_v13  ;;  %1893 = vmatprep.subr.bf16.mxu0 %v1892_v14  ;;  %v441_v13 = vld [vmem:[%s2169_s27 + $0x4d8] sm:$0xff]  ;;  %v472_v14 = vld [vmem:[%s2169_s27 + $0x5d0] sm:$0xff]  ;;  %v495_v49 = vld [vmem:[%s2169_s27 + $0x688] sm:$0xff]  ;;  %v1954_v53 = vpack.c.bf16 %v461_v47, %v460_v45 }
  0x55   : > { %1925 = vmatprep.subr.bf16.mxu1 %v1924_v18  ;;  %v1912_v18 = vpack.c.bf16 %v441_v13, %v440_v12  ;;  %v1944_v22 = vpack.c.bf16 %v473_v15, %v472_v14  ;;  %v526_v50 = vld [vmem:[%s2169_s27 + $0x780] sm:$0xff]  ;;  %v527_v51 = vld [vmem:[%s2169_s27 + $0x788] sm:$0xff]  ;;  %v260_v61 = vld [vmem:[%s2572_s1 + $0x50] sm:$0xff] }
  0x56   : > { %768 = vmatmul.mubr.f32.vlgmr.msra.gmra.mrb[4].mxu0 %v254_v17  ;;  %v1942_v17 = vpack.c.bf16 %v455_v11, %v454_v9  ;;  %v510_v59 = vld [vmem:[%s2169_s27 + $0x700] sm:$0xff]  ;;  %v511_v60 = vld [vmem:[%s2169_s27 + $0x708] sm:$0xff]  ;;  %v497_v63 = vld [vmem:[%s2169_s27 + $0x698] sm:$0xff] }
  0x57   : > { %1895 = vmatpush3.bf16.msra.mxu0 %v1894_v24  ;;  %843 = vmatmul.mubr.f32.vlgmr.msra.gmra.mrb[4].mxu1 %v256_v21  ;;  %v456_v21 = vld [vmem:[%s2169_s27 + $0x550] sm:$0xff]  ;;  %v442_v24 = vld [vmem:[%s2169_s27 + $0x4e0] sm:$0xff]  ;;  %v529_v3 = vld [vmem:[%s2169_s27 + $0x798] sm:$0xff] }
  0x58   : > { %772 = vmatprep.mubr.f32.mxu0 %v272_v25  ;;  %1927 = vmatpush3.bf16.msra.mxu1 %v1926_v28  ;;  %v443_v25 = vld [vmem:[%s2169_s27 + $0x4e8] sm:$0xff]  ;;  %v1914_v28 = vpack.c.bf16 %v425_v20, %v424_v19  ;;  %v1946_v29 = vpack.c.bf16 %v457_v23, %v456_v21  ;;  %v276_v1 = vld [vmem:[%s2572_s1 + $0xd0] sm:$0xff]  ;;  %v513_v9 = vld [vmem:[%s2169_s27 + $0x718] sm:$0xff] }
  0x59   : > { %1897 = vmatprep.subr.bf16.mxu0 %v1896_v32  ;;  %847 = vmatprep.mubr.f32.mxu1 %v274_v36  ;;  %v1916_v30 = vpack.c.bf16 %v443_v25, %v442_v24  ;;  %v427_v32 = vld [vmem:[%s2169_s27 + $0x468] sm:$0xff]  ;;  %v444_v36 = vld [vmem:[%s2169_s27 + $0x4f0] sm:$0xff]  ;;  %v278_v12 = vld [vmem:[%s2572_s1 + $0xe0] sm:$0xff] }
  0x5a   : > { %773 = vmatmul.mubr.f32.gmra.mrb[6].mxu0 %v271_v40  ;;  %1929 = vmatprep.subr.bf16.mxu1 %v1928_v37  ;;  %v445_v37 = vld [vmem:[%s2169_s27 + $0x4f8] sm:$0xff]  ;;  %v1918_v40 = vpack.c.bf16 %v427_v32, %v426_v31  ;;  %v528_v2 = vld [vmem:[%s2169_s27 + $0x790] sm:$0xff]  ;;  %v499_v11 = vld [vmem:[%s2169_s27 + $0x6a8] sm:$0xff] }
  0x5b   : > { %1899 = vmatpush3.bf16.msra.mxu0 %v1898_v41  ;;  %848 = vmatmul.mubr.f32.gmra.mrb[6].mxu1 %v273_v42  ;;  %v1950_v41 = vpack.c.bf16 %v459_v35, %v458_v33  ;;  %v1920_v42 = vpack.c.bf16 %v445_v37, %v444_v36  ;;  %v512_v7 = vld [vmem:[%s2169_s27 + $0x710] sm:$0xff]  ;;  %v1992_v13 = vpack.c.bf16 %v529_v3, %v528_v2  ;;  %v530_v14 = vld [vmem:[%s2169_s27 + $0x7a0] sm:$0xff]  ;;  %v531_v15 = vld [vmem:[%s2169_s27 + $0x7a8] sm:$0xff] }
  0x5c   : > { %1931 = vmatpush3.bf16.msra.mxu1 %v1930_v43  ;;  %1901 = vmatprep.subr.bf16.mxu0 %v1900_v44  ;;  %v428_v43 = vld [vmem:[%s2169_s27 + $0x470] sm:$0xff]  ;;  %v429_v44 = vld [vmem:[%s2169_s27 + $0x478] sm:$0xff]  ;;  %v1994_v19 = vpack.c.bf16 %v513_v9, %v512_v7  ;;  %v482_v21 = vld [vmem:[%s2169_s27 + $0x620] sm:$0xff]  ;;  %v1996_v24 = vpack.c.bf16 %v531_v15, %v530_v14 }
  0x5d   : > { %1933 = vmatprep.subr.bf16.mxu1 %v1932_v48  ;;  %917 = vmatprep.mubr.f32.mxu0 %v259_v54  ;;  %v494_v48 = vld [vmem:[%s2169_s27 + $0x680] sm:$0xff]  ;;  %v1922_v52 = vpack.c.bf16 %v429_v44, %v428_v43  ;;  %v515_v25 = vld [vmem:[%s2169_s27 + $0x728] sm:$0xff]  ;;  %v500_v26 = vld [vmem:[%s2169_s27 + $0x6b0] sm:$0xff] }
  0x5e   : > { %992 = vmatprep.mubr.f32.mxu1 %v261_v56  ;;  %v1956_v54 = vpack.c.bf16 %v495_v49, %v494_v48  ;;  %v479_v56 = vld [vmem:[%s2169_s27 + $0x608] sm:$0xff]  ;;  %v514_v23 = vld [vmem:[%s2169_s27 + $0x720] sm:$0xff]  ;;  %v501_v27 = vld [vmem:[%s2169_s27 + $0x6b8] sm:$0xff] }
  0x5f   : > { %1903 = vmatpush3.bf16.msra.mxu0 %v1902_v55  ;;  %v478_v55 = vld [vmem:[%s2169_s27 + $0x600] sm:$0xff]  ;;  %v265_v32 = vld [vmem:[%s2572_s1 + $0x78] sm:$0xff]  ;;  %v1998_v33 = vpack.c.bf16 %v515_v25, %v514_v23  ;;  %v484_v35 = vld [vmem:[%s2169_s27 + $0x630] sm:$0xff] }
  0x60   : > { %1935 = vmatpush3.bf16.msra.mxu1 %v1934_v57  ;;  %1905 = vmatprep.subr.bf16.mxu0 %v1904_v58  ;;  %v258_v57 = vld [vmem:[%s2572_s1 + $0x40] sm:$0xff]  ;;  %v1988_v58 = vpack.c.bf16 %v527_v51, %v526_v50  ;;  %v1958_v0 = vpack.c.bf16 %v479_v56, %v478_v55  ;;  %v485_v36 = vld [vmem:[%s2169_s27 + $0x638] sm:$0xff]  ;;  %v516_v37 = vld [vmem:[%s2169_s27 + $0x730] sm:$0xff] }
  0x61   : > { %1937 = vmatprep.subr.bf16.mxu1 %v1936_v62  ;;  %v496_v62 = vld [vmem:[%s2169_s27 + $0x690] sm:$0xff]  ;;  %v517_v39 = vld [vmem:[%s2169_s27 + $0x738] sm:$0xff]  ;;  %v535_v43 = vld [vmem:[%s2169_s27 + $0x7c8] sm:$0xff]  ;;  %v1970_v44 = vpack.c.bf16 %v485_v36, %v484_v35 }
  0x62   : > { %v1960_v8 = vpack.c.bf16 %v497_v63, %v496_v62  ;;  %v2002_v45 = vpack.c.bf16 %v517_v39, %v516_v37  ;;  %v486_v47 = vld [vmem:[%s2169_s27 + $0x640] sm:$0xff]  ;;  %v487_v48 = vld [vmem:[%s2169_s27 + $0x648] sm:$0xff]  ;;  %v537_v55 = vld [vmem:[%s2169_s27 + $0x7d8] sm:$0xff] }
  0x63   : > { %1907 = vmatpush3.bf16.msra.mxu0 %v1906_v4  ;;  %v1990_v4 = vpack.c.bf16 %v511_v60, %v510_v59  ;;  %v518_v49 = vld [vmem:[%s2169_s27 + $0x740] sm:$0xff]  ;;  %v519_v51 = vld [vmem:[%s2169_s27 + $0x748] sm:$0xff]  ;;  %v1974_v56 = vpack.c.bf16 %v487_v48, %v486_v47  ;;  %v488_v59 = vld [vmem:[%s2169_s27 + $0x650] sm:$0xff] }
  0x64   : > { %1939 = vmatpush3.bf16.msra.mxu1 %v1938_v5  ;;  %1909 = vmatprep.subr.bf16.mxu0 %v1908_v6  ;;  %v480_v5 = vld [vmem:[%s2169_s27 + $0x610] sm:$0xff]  ;;  %v481_v6 = vld [vmem:[%s2169_s27 + $0x618] sm:$0xff]  ;;  %v538_v2 = vld [vmem:[%s2169_s27 + $0x7e0] sm:$0xff] }
  0x65   : > { %1941 = vmatprep.subr.bf16.mxu1 %v1940_v10  ;;  %v498_v10 = vld [vmem:[%s2169_s27 + $0x6a0] sm:$0xff]  ;;  %v489_v60 = vld [vmem:[%s2169_s27 + $0x658] sm:$0xff]  ;;  %v539_v3 = vld [vmem:[%s2169_s27 + $0x7e8] sm:$0xff] }
  0x66   : > { %v1964_v20 = vpack.c.bf16 %v499_v11, %v498_v10  ;;  %v521_v63 = vld [vmem:[%s2169_s27 + $0x758] sm:$0xff]  ;;  %v490_v7 = vld [vmem:[%s2169_s27 + $0x660] sm:$0xff]  ;;  %v2012_v10 = vpack.c.bf16 %v539_v3, %v538_v2  ;;  %v523_v11 = vld [vmem:[%s2169_s27 + $0x768] sm:$0xff] }
  0x67   : > { %1911 = vmatpush3.bf16.msra.mxu0 %v1910_v16  ;;  %v275_v16 = vld [vmem:[%s2572_s1 + $0xc8] sm:$0xff]  ;;  %v522_v9 = vld [vmem:[%s2169_s27 + $0x760] sm:$0xff]  ;;  %v540_v14 = vld [vmem:[%s2169_s27 + $0x7f0] sm:$0xff] }
  0x68   : > { %1943 = vmatpush3.bf16.msra.mxu1 %v1942_v17  ;;  %1913 = vmatprep.subr.bf16.mxu0 %v1912_v18  ;;  %v1962_v17 = vpack.c.bf16 %v481_v6, %v480_v5  ;;  %v277_v18 = vld [vmem:[%s2572_s1 + $0xd8] sm:$0xff]  ;;  %v543_v25 = vld [vmem:[%s2169_s27 + $0x808] sm:$0xff]  ;;  %v282_v35 = vld [vmem:[%s2572_s1 + $0x100] sm:$0xff] }
  0x69   : > { %1945 = vmatprep.subr.bf16.mxu1 %v1944_v22  ;;  %v483_v22 = vld [vmem:[%s2169_s27 + $0x628] sm:$0xff]  ;;  %v541_v15 = vld [vmem:[%s2169_s27 + $0x7f8] sm:$0xff] }
  0x6a   : > { %v1966_v31 = vpack.c.bf16 %v483_v22, %v482_v21  ;;  %v524_v21 = vld [vmem:[%s2169_s27 + $0x770] sm:$0xff]  ;;  %v2016_v22 = vpack.c.bf16 %v541_v15, %v540_v14  ;;  %v525_v23 = vld [vmem:[%s2169_s27 + $0x778] sm:$0xff]  ;;  %v279_v36 = vld [vmem:[%s2572_s1 + $0xe8] sm:$0xff] }
  0x6b   : > { %1915 = vmatpush3.bf16.msra.mxu0 %v1914_v28  ;;  %v532_v28 = vld [vmem:[%s2169_s27 + $0x7b0] sm:$0xff]  ;;  %v281_v37 = vld [vmem:[%s2572_s1 + $0xf8] sm:$0xff]  ;;  %v283_v39 = vld [vmem:[%s2572_s1 + $0x108] sm:$0xff] }
  0x6c   : > { %1947 = vmatpush3.bf16.msra.mxu1 %v1946_v29  ;;  %1917 = vmatprep.subr.bf16.mxu0 %v1916_v30  ;;  %v533_v29 = vld [vmem:[%s2169_s27 + $0x7b8] sm:$0xff]  ;;  %v263_v30 = vld [vmem:[%s2572_s1 + $0x68] sm:$0xff] }
  0x6d   : > { %1949 = vmatprep.subr.bf16.mxu1 %v1948_v34  ;;  %v1968_v34 = vpack.c.bf16 %v501_v27, %v500_v26  ;;  %v2000_v38 = vpack.c.bf16 %v533_v29, %v532_v28  ;;  %v2018_v27 = vpack.c.bf16 %v525_v23, %v524_v21  ;;  %v544_v29 = vld [vmem:[%s2169_s27 + $0x810] sm:$0xff] }
  0x6f   : > { %1919 = vmatpush3.bf16.msra.mxu0 %v1918_v40  ;;  %v502_v40 = vld [vmem:[%s2169_s27 + $0x6c0] sm:$0xff] }
  0x70   : > { %1951 = vmatpush3.bf16.msra.mxu1 %v1950_v41  ;;  %1921 = vmatprep.subr.bf16.mxu0 %v1920_v42  ;;  %v503_v41 = vld [vmem:[%s2169_s27 + $0x6c8] sm:$0xff]  ;;  %v534_v42 = vld [vmem:[%s2169_s27 + $0x7c0] sm:$0xff] }
  0x71   : > { %1953 = vmatprep.subr.bf16.mxu1 %v1952_v46  ;;  %v1972_v46 = vpack.c.bf16 %v503_v41, %v502_v40  ;;  %v2004_v50 = vpack.c.bf16 %v535_v43, %v534_v42  ;;  %v2094_v40 = vmov 0.0  }
  0x72   : > { %249 = vst.msk [vmem:[#allocation2 + $0x8] sm:$0xff] %vm247_vm1, %v2094_v40  ;;  %248 = vst.msk [vmem:[#allocation2] sm:$0xff] %vm247_vm1, %v2094_v40 }
  0x73   : > { %1923 = vmatpush3.bf16.msra.mxu0 %v1922_v52  ;;  %v504_v52 = vld [vmem:[%s2169_s27 + $0x6d0] sm:$0xff] }
  0x74   : > { %1955 = vmatpush3.bf16.msra.mxu1 %v1954_v53  ;;  %1957 = vmatprep.subr.bf16.mxu0 %v1956_v54  ;;  %v505_v53 = vld [vmem:[%s2169_s27 + $0x6d8] sm:$0xff]  ;;  %v536_v54 = vld [vmem:[%s2169_s27 + $0x7d0] sm:$0xff] }
  0x75   : > { %1989 = vmatprep.subr.bf16.mxu1 %v1988_v58  ;;  %v1976_v58 = vpack.c.bf16 %v505_v53, %v504_v52  ;;  %v2008_v62 = vpack.c.bf16 %v537_v55, %v536_v54 }
  0x76   : > { %918 = vmatmul.mubr.f32.vlgmr.msra.gmra.mrb[8].mxu0 %v258_v57  ;;  %v2006_v57 = vpack.c.bf16 %v519_v51, %v518_v49 }
  0x77   : > { %1959 = vmatpush3.bf16.msra.mxu0 %v1958_v0  ;;  %993 = vmatmul.mubr.f32.vlgmr.msra.gmra.mrb[8].mxu1 %v260_v61  ;;  %v520_v61 = vld [vmem:[%s2169_s27 + $0x750] sm:$0xff]  ;;  %v506_v0 = vld [vmem:[%s2169_s27 + $0x6e0] sm:$0xff] }
  0x78   : > { %922 = vmatprep.mubr.f32.mxu0 %v276_v1  ;;  %1991 = vmatpush3.bf16.msra.mxu1 %v1990_v4  ;;  %v507_v1 = vld [vmem:[%s2169_s27 + $0x6e8] sm:$0xff]  ;;  %v1978_v4 = vpack.c.bf16 %v489_v60, %v488_v59  ;;  %v2010_v5 = vpack.c.bf16 %v521_v63, %v520_v61 }
  0x79   : > { %1961 = vmatprep.subr.bf16.mxu0 %v1960_v8  ;;  %997 = vmatprep.mubr.f32.mxu1 %v278_v12  ;;  %v1980_v6 = vpack.c.bf16 %v507_v1, %v506_v0  ;;  %v491_v8 = vld [vmem:[%s2169_s27 + $0x668] sm:$0xff]  ;;  %v508_v12 = vld [vmem:[%s2169_s27 + $0x6f0] sm:$0xff] }
  0x7a   : > { %923 = vmatmul.mubr.f32.gmra.mrb[10].mxu0 %v275_v16  ;;  %1993 = vmatprep.subr.bf16.mxu1 %v1992_v13  ;;  %v509_v13 = vld [vmem:[%s2169_s27 + $0x6f8] sm:$0xff]  ;;  %v1982_v16 = vpack.c.bf16 %v491_v8, %v490_v7 }
  0x7b   : > { %1963 = vmatpush3.bf16.msra.mxu0 %v1962_v17  ;;  %998 = vmatmul.mubr.f32.gmra.mrb[10].mxu1 %v277_v18  ;;  %v2014_v17 = vpack.c.bf16 %v523_v11, %v522_v9  ;;  %v1984_v18 = vpack.c.bf16 %v509_v13, %v508_v12 }
  0x7c   : > { %1995 = vmatpush3.bf16.msra.mxu1 %v1994_v19  ;;  %1965 = vmatprep.subr.bf16.mxu0 %v1964_v20  ;;  %v492_v19 = vld [vmem:[%s2169_s27 + $0x670] sm:$0xff]  ;;  %v493_v20 = vld [vmem:[%s2169_s27 + $0x678] sm:$0xff] }
  0x7d   : > { %1997 = vmatprep.subr.bf16.mxu1 %v1996_v24  ;;  %1067 = vmatprep.mubr.f32.mxu0 %v263_v30  ;;  %v542_v24 = vld [vmem:[%s2169_s27 + $0x800] sm:$0xff]  ;;  %v1986_v26 = vpack.c.bf16 %v493_v20, %v492_v19  ;;  %v545_v30 = vld [vmem:[%s2169_s27 + $0x818] sm:$0xff] }
  0x7e   : > { %1142 = vmatprep.mubr.f32.mxu1 %v265_v32  ;;  %v2020_v28 = vpack.c.bf16 %v543_v25, %v542_v24  ;;  %v264_v32 = vld [vmem:[%s2572_s1 + $0x70] sm:$0xff] }
  0x7f   : > { %1967 = vmatpush3.bf16.msra.mxu0 %v1966_v31  ;;  %v262_v31 = vld [vmem:[%s2572_s1 + $0x60] sm:$0xff] }
  0x80   : > { %1999 = vmatpush3.bf16.msra.mxu1 %v1998_v33  ;;  %1969 = vmatprep.subr.bf16.mxu0 %v1968_v34  ;;  %v2024_v33 = vpack.c.bf16 %v545_v30, %v544_v29  ;;  %v280_v34 = vld [vmem:[%s2572_s1 + $0xf0] sm:$0xff] }
  0x81   : > { %2001 = vmatprep.subr.bf16.mxu1 %v2000_v38  ;;  %v266_v38 = vld [vmem:[%s2572_s1 + $0x80] sm:$0xff] }
  0x83   : > { %1971 = vmatpush3.bf16.msra.mxu0 %v1970_v44 }
  0x84   : > { %2003 = vmatpush3.bf16.msra.mxu1 %v2002_v45  ;;  %1973 = vmatprep.subr.bf16.mxu0 %v1972_v46 }
  0x85   : > { %2005 = vmatprep.subr.bf16.mxu1 %v2004_v50 }
  0x87   : > { %1975 = vmatpush3.bf16.msra.mxu0 %v1974_v56 }
  0x88   : > { %2007 = vmatpush3.bf16.msra.mxu1 %v2006_v57  ;;  %1977 = vmatprep.subr.bf16.mxu0 %v1976_v58 }
  0x89   : > { %2009 = vmatprep.subr.bf16.mxu1 %v2008_v62 }
  0x8b   : > { %1979 = vmatpush3.bf16.msra.mxu0 %v1978_v4 }
  0x8c   : > { %2011 = vmatpush3.bf16.msra.mxu1 %v2010_v5  ;;  %1981 = vmatprep.subr.bf16.mxu0 %v1980_v6 }
  0x8d   : > { %2013 = vmatprep.subr.bf16.mxu1 %v2012_v10 }
  0x8f   : > { %1983 = vmatpush3.bf16.msra.mxu0 %v1982_v16 }
  0x90   : > { %2015 = vmatpush3.bf16.msra.mxu1 %v2014_v17  ;;  %1985 = vmatprep.subr.bf16.mxu0 %v1984_v18 }
  0x91   : > { %2017 = vmatprep.subr.bf16.mxu1 %v2016_v22 }
  0x93   : > { %1987 = vmatpush3.bf16.msra.mxu0 %v1986_v26 }
  0x94   : > { %2019 = vmatpush3.bf16.msra.mxu1 %v2018_v27  ;;  %2021 = vmatprep.subr.bf16.mxu0 %v2020_v28 }
  0x96   : > { %1068 = vmatmul.mubr.f32.vlgmr.msra.gmra.mrb[12].mxu0 %v262_v31 }
  0x97   : > { %2023 = vmatpush3.bf16.msra.mxu0 %v2020_v28  ;;  %1143 = vmatmul.mubr.f32.vlgmr.msra.gmra.mrb[12].mxu1 %v264_v32 }
  0x98   : > { %1072 = vmatprep.mubr.f32.mxu0 %v280_v34  ;;  %2025 = vmatprep.subr.bf16.mxu0 %v2024_v33 }
  0x99   : > { %1147 = vmatprep.mubr.f32.mxu1 %v282_v35 }
  0x9a   : > { %1073 = vmatmul.mubr.f32.gmra.mrb[14].mxu0 %v279_v36 }
  0x9b   : > { %2027 = vmatpush3.bf16.msra.mxu0 %v2024_v33  ;;  %1148 = vmatmul.mubr.f32.gmra.mrb[14].mxu1 %v281_v37 }
  0x9c   : > { %1761 = vmatprep.mubr.msk.f32.mxu0 %vm546_vm0, %v266_v38 }
  0x9e   : > { %1762 = vmatmul.mubr.msk.f32.vlgmr.msra.gmra.mrb[16].mxu0 %vm546_vm0, %v283_v39  ;;  %v284_v39 = vld [vmem:[#allocation2] sm:$0xff] }
 0x109   : > { %v1475_v41 = vpop.f32.mrb[0].mxu0 }
 0x10a   : > { %v1513_v42 = vpop.f32.mrb[0].mxu1  ;;  %v1476_v43 = vpop.f32.mrb[1].mxu0 }
 0x10b   : > { %v1477_v44 = vadd.f32 %v1476_v43, %v1475_v41  ;;  %v1514_v45 = vpop.f32.mrb[1].mxu1  ;;  %v285_v43 = vld [vmem:[#allocation2 + $0x8] sm:$0xff] }
 0x10c   : > { %v1515_v46 = vadd.f32 %v1514_v45, %v1513_v42 }
 0x10d   : > { %v1478_v47 = vpop.f32.mrb[2].mxu0 }
 0x10e   : > { %v695_v48 = vadd.f32 %v1515_v46, %v1477_v44  ;;  %v1516_v49 = vpop.f32.mrb[2].mxu1  ;;  %v1479_v50 = vpop.f32.mrb[3].mxu0 }
 0x10f   : > { %v1480_v51 = vadd.f32 %v1479_v50, %v1478_v47  ;;  %v1517_v52 = vpop.f32.mrb[3].mxu1  ;;  %v1251_v47 = vld [vmem:[%s2573_s2 + $0x1] sm:$0x1] }
 0x110   : > { %v1518_v53 = vadd.f32 %v1517_v52, %v1516_v49 }
 0x112   : > { %v700_v54 = vadd.f32 %v1518_v53, %v1480_v51 }
 0x129   : > { %v1551_v55 = vpop.f32.mrb[4].mxu0 }
 0x12a   : > { %v1552_v56 = vpop.f32.mrb[5].mxu0  ;;  %v1589_v57 = vpop.f32.mrb[4].mxu1 }
 0x12b   : > { %v1553_v58 = vadd.f32 %v1552_v56, %v1551_v55  ;;  %v1590_v59 = vpop.f32.mrb[5].mxu1 }
 0x12c   : > { %v1591_v60 = vadd.f32 %v1590_v59, %v1589_v57  ;;  %v1277_v57 = vld [vmem:[%s2573_s2 + $0x3] sm:$0x1] }
 0x12d   : > { %v770_v61 = vadd.f32 %v1553_v58, %v695_v48  ;;  %v1554_v62 = vpop.f32.mrb[6].mxu0  ;;  %v1238_v48 = vld [vmem:[%s2573_s2] sm:$0x1] }
 0x12e   : > { %v1555_v63 = vpop.f32.mrb[7].mxu0  ;;  %v1592_v0 = vpop.f32.mrb[6].mxu1 }
 0x12f   : > { %v845_v1 = vadd.f32 %v1591_v60, %v770_v61  ;;  %v1556_v2 = vadd.f32 %v1555_v63, %v1554_v62  ;;  %v1593_v3 = vpop.f32.mrb[7].mxu1  ;;  %v1294_v60 = vld [vmem:[%s2573_s2 + $0x5] sm:$0x1]  ;;  %v1307_v63 = vld [vmem:[%s2573_s2 + $0x6] sm:$0x1] }
 0x130   : > { %v1594_v4 = vadd.f32 %v1593_v3, %v1592_v0 }
 0x131   : > { %v775_v5 = vadd.f32 %v1556_v2, %v700_v54  ;;  %v1264_v54 = vld [vmem:[%s2573_s2 + $0x2] sm:$0x1]  ;;  %v1320_v2 = vld [vmem:[%s2573_s2 + $0x7] sm:$0x1] }
 0x133   : > { %v850_v6 = vadd.f32 %v1594_v4, %v775_v5  ;;  %v1333_v5 = vld [vmem:[%s2573_s2 + $0x8] sm:$0x1] }
 0x149   : > { %v1627_v7 = vpop.f32.mrb[8].mxu0 }
 0x14a   : > { %v1628_v8 = vpop.f32.mrb[9].mxu0  ;;  %v1665_v9 = vpop.f32.mrb[8].mxu1 }
 0x14b   : > { %v1629_v10 = vadd.f32 %v1628_v8, %v1627_v7  ;;  %v1666_v11 = vpop.f32.mrb[9].mxu1 }
 0x14c   : > { %v1667_v12 = vadd.f32 %v1666_v11, %v1665_v9 }
 0x14d   : > { %v920_v13 = vadd.f32 %v1629_v10, %v845_v1  ;;  %v1630_v14 = vpop.f32.mrb[10].mxu0 }
 0x14e   : > { %v1631_v15 = vpop.f32.mrb[11].mxu0  ;;  %v1668_v16 = vpop.f32.mrb[10].mxu1 }
 0x14f   : > { %v995_v17 = vadd.f32 %v1667_v12, %v920_v13  ;;  %v1632_v18 = vadd.f32 %v1631_v15, %v1630_v14  ;;  %v1669_v19 = vpop.f32.mrb[11].mxu1 }
 0x150   : > { %v1670_v20 = vadd.f32 %v1669_v19, %v1668_v16 }
 0x151   : > { %v925_v21 = vadd.f32 %v1632_v18, %v850_v6 }
 0x153   : > { %v1000_v22 = vadd.f32 %v1670_v20, %v925_v21 }
 0x169   : > { %v1703_v23 = vpop.f32.mrb[12].mxu0 }
 0x16a   : > { %v1704_v24 = vpop.f32.mrb[13].mxu0  ;;  %v1741_v25 = vpop.f32.mrb[12].mxu1 }
 0x16b   : > { %v1705_v26 = vadd.f32 %v1704_v24, %v1703_v23  ;;  %v1742_v27 = vpop.f32.mrb[13].mxu1 }
 0x16c   : > { %v1743_v28 = vadd.f32 %v1742_v27, %v1741_v25 }
 0x16d   : > { %v1070_v29 = vadd.f32 %v1705_v26, %v995_v17  ;;  %v1706_v30 = vpop.f32.mrb[14].mxu0 }
 0x16e   : > { %v1707_v31 = vpop.f32.mrb[15].mxu0  ;;  %v1744_v32 = vpop.f32.mrb[14].mxu1 }
 0x16f   : > { %v1708_v33 = vadd.f32 %v1707_v31, %v1706_v30  ;;  %v1745_v34 = vpop.f32.mrb[15].mxu1  ;;  %v1145_v35 = vadd.f32 %v1743_v28, %v1070_v29 }
 0x170   : > { %v1746_v36 = vadd.f32 %v1745_v34, %v1744_v32 }
 0x171   : > { %v1075_v37 = vadd.f32 %v1708_v33, %v1000_v22  ;;  %v1763_v38 = vpop.f32.mrb[16].mxu0  ;;  %v1290_v22 = vld [vmem:[%s2573_s2 + $0x4] sm:$0x1] }
 0x172   : > { %v1219_v40 = vpop.f32.mrb[17].mxu0 }
 0x173   : > { %v1150_v41 = vadd.f32 %v1746_v36, %v1075_v37  ;;  %v1220_v42 = vadd.f32 %v1219_v40, %v1145_v35 }
 0x175   : > { %v1225_v44 = vadd.f32 %v1763_v38, %v1150_v41  ;;  %v1228_v45 = vadd.f32 %v1220_v42, %v284_v39  ;;  %v1345_v41 = vstv %s1236_s10 }
 0x177   : > { %v1229_v46 = vadd.f32 %v1225_v44, %v285_v43  ;;  %1231 = vst.msk [vmem:[#allocation2] sm:$0xff] %vm247_vm1, %v1228_v45 }
 0x179   : > { %1232 = vst.msk [vmem:[#allocation2 + $0x8] sm:$0xff] %vm247_vm1, %v1229_v46 }
 0x17e   : > { %v1250_v49 = vld [vmem:[#allocation2 + $0x1] sm:$0x1]  ;;  %v1237_v50 = vld [vmem:[#allocation2] sm:$0x1]  ;;  %v1263_v53 = vld [vmem:[#allocation2 + $0x2] sm:$0x1] }
 0x17f   : > { %v1252_v51 = vmul.f32 %v1251_v47, %v1250_v49  ;;  %v1239_v52 = vmul.f32 %v1238_v48, %v1237_v50  ;;  %v1265_v55 = vmul.f32 %v1264_v54, %v1263_v53  ;;  %v1276_v56 = vld [vmem:[#allocation2 + $0x3] sm:$0x1]  ;;  %v1293_v59 = vld [vmem:[#allocation2 + $0x5] sm:$0x1]  ;;  %v1306_v62 = vld [vmem:[#allocation2 + $0x6] sm:$0x1] }
 0x180   : > { %v1278_v58 = vmul.f32 %v1277_v57, %v1276_v56  ;;  %v1295_v61 = vmul.f32 %v1294_v60, %v1293_v59  ;;  %v1308_v0 = vmul.f32 %v1307_v63, %v1306_v62  ;;  %v1319_v1 = vld [vmem:[#allocation2 + $0x7] sm:$0x1]  ;;  %v1332_v4 = vld [vmem:[#allocation2 + $0x8] sm:$0x1]  ;;  %v1289_v21 = vld [vmem:[#allocation2 + $0x4] sm:$0x1] }
 0x181   : > { %1254 = vrot.lane.b32.xlu1 %v1252_v51, %s2095_s29  ;;  %1241 = vrot.lane.b32.xlu0 %v1239_v52, %s2096_s30  ;;  %v1321_v3 = vmul.f32 %v1320_v2, %v1319_v1  ;;  %s2107_s30 = smov 56   ;;  %v1334_v6 = vmul.f32 %v1333_v5, %v1332_v4  ;;  %v1291_v26 = vmul.f32 %v1290_v22, %v1289_v21 }
 0x185   : > { %1257 = vrot.lane.b32.xlu1 %v1252_v51, %s2097_s7  ;;  %1244 = vrot.lane.b32.xlu0 %v1239_v52, %s2098_s8  ;;  %s2110_s7 = smov 119  }
 0x189   : > { %1270 = vrot.lane.b32.xlu1 %v1265_v55, %s2099_s11  ;;  %1267 = vrot.lane.b32.xlu0 %v1265_v55, %s2100_s12 }
 0x18d   : > { %1283 = vrot.lane.b32.xlu1 %v1278_v58, %s2101_s14  ;;  %1280 = vrot.lane.b32.xlu0 %v1278_v58, %s2102_s15 }
 0x191   : > { %1300 = vrot.lane.b32.xlu1 %v1295_v61, %s2103_s21  ;;  %1297 = vrot.lane.b32.xlu0 %v1295_v61, %s2104_s22 }
 0x195   : > { %1313 = vrot.lane.b32.xlu1 %v1308_v0, %s2105_s25  ;;  %1310 = vrot.lane.b32.xlu0 %v1308_v0, %s2106_s26 }
 0x199   : > { %1326 = vrot.lane.b32.xlu1 %v1321_v3, %s2107_s30  ;;  %1323 = vrot.lane.b32.xlu0 %v1321_v3, %s2108_s5 }
 0x19d   : > { %1339 = vrot.lane.b32.xlu1 %v1334_v6, %s2109_s6  ;;  %1336 = vrot.lane.b32.xlu0 %v1334_v6, %s2110_s7 }
 0x1f3   : > { %v1255_v7 = vpop.permute.xlu1 %1254  ;;  %v1242_v8 = vpop.permute.xlu0 %1241 }
 0x1f7   : > { %v1258_v9 = vpop.permute.xlu1 %1257  ;;  %v1245_v10 = vpop.permute.xlu0 %1244 }
 0x1f8   : > { %v1261_v13 = vsel %vm1260_vm2, %v1255_v7, %v1258_v9  ;;  %v1248_v14 = vsel %vm1247_vm3, %v1242_v8, %v1245_v10 }
 0x1f9   : > { %v1262_v16 = vadd.f32 %v1261_v13, %v1248_v14 }
 0x1fb   : > { %v1271_v11 = vpop.permute.xlu1 %1270  ;;  %v1268_v12 = vpop.permute.xlu0 %1267 }
 0x1fc   : > { %v1274_v15 = vsel %vm1273_vm4, %v1268_v12, %v1271_v11 }
 0x1fd   : > { %v1275_v20 = vadd.f32 %v1274_v15, %v1262_v16 }
 0x1ff   : > { %v1284_v17 = vpop.permute.xlu1 %1283  ;;  %v1281_v18 = vpop.permute.xlu0 %1280 }
 0x200   : > { %v1287_v19 = vsel %vm1286_vm5, %v1281_v18, %v1284_v17 }
 0x201   : > { %v1288_v23 = vadd.f32 %v1287_v19, %v1275_v20 }
 0x203   : > { %v1301_v24 = vpop.permute.xlu1 %1300  ;;  %v1298_v25 = vpop.permute.xlu0 %1297  ;;  %v1292_v27 = vadd.f32 %v1291_v26, %v1288_v23 }
 0x204   : > { %v1304_v30 = vsel %vm1303_vm6, %v1298_v25, %v1301_v24 }
 0x205   : > { %v1305_v32 = vadd.f32 %v1304_v30, %v1292_v27 }
 0x207   : > { %v1314_v28 = vpop.permute.xlu1 %1313  ;;  %v1311_v29 = vpop.permute.xlu0 %1310 }
 0x208   : > { %v1317_v31 = vsel %vm1316_vm7, %v1311_v29, %v1314_v28 }
 0x209   : > { %v1318_v36 = vadd.f32 %v1317_v31, %v1305_v32 }
 0x20b   : > { %v1327_v33 = vpop.permute.xlu1 %1326  ;;  %v1324_v34 = vpop.permute.xlu0 %1323 }
 0x20c   : > { %v1330_v35 = vsel %vm1329_vm8, %v1324_v34, %v1327_v33 }
 0x20d   : > { %v1331_v37 = vadd.f32 %v1330_v35, %v1318_v36 }
 0x20f   : > { %v1340_v38 = vpop.permute.xlu1 %1339  ;;  %v1337_v39 = vpop.permute.xlu0 %1336 }
 0x210   : > { %v1343_v40 = vsel %vm1342_vm9, %v1337_v39, %v1340_v38 }
 0x211   : > { %v1344_v42 = vadd.f32 %v1343_v40, %v1331_v37 }
 0x213   : > { %v1346_v43 = vadd.f32 %v1345_v41, %v1344_v42 }
 0x215   : > { %v1347_v44 = vmax.f32 %v1346_v43, 0.0 }
 0x217   : > { %v1349_v45 = vsel %vm1348_vm10, %v1347_v44, 0.0 }
 0x218   : > { %1350 = vadd.xlane.f32.xlu0 %v1349_v45 }
 0x2a5   : > { %v1351_v46 = vpop.xlane.xlu0 %1350 }
 0x2a6   : > { %v1352_v47 = vmul.f32 0.015625, %v1351_v46 }
 0x2a8   : > { %1354 = vst.msk [vmem:[%s242_s13] sm:$0x1] %vm1353_vm11, %v1352_v47 }
 0x2a9 PF: > { %s15_s19 = sadd.s32 1, %s2092_s19   ;;  %s2576_s17 = smov %s2088_s18 }
 0x2aa   : > { %p12_p5 = scmp.ge.s32.totalorder %s15_s19, 4   ;;  %s2577_s18 = smov %s2579_s3 }
 0x2ac   :  { %14 = sbr.rel (!%p12_p5) target bundleno = 2 (0x2), region = 77 }

</bundles_post_ra>
